<compile_context>
chip_gen: v5e
topology: v5e:2x2
jax: 0.10.0
libtpu: 0.0.40
codegen_flags: <defaults>
</compile_context>

<pallas_src>
import functools
import math

import jax
import jax.numpy as jnp
from jax.experimental import pallas as pl
from jax.experimental.pallas import tpu as pltpu

LANE = 128  # padded width for hidden / class lane dims


# ----------------------------------------------------------------------------
# helpers
# ----------------------------------------------------------------------------
def _round_up(x, m):
    return (x + m - 1) // m * m


def _vmem_budget_bytes():
    """Per-generation scoped-VMEM budget (leave headroom for compiler scratch)."""
    cap = 64 * 1024 * 1024  # conservative default: v7x physical VMEM per TC
    try:
        cap = int(pltpu.get_tpu_info().vmem_capacity_bytes)
    except Exception:
        pass
    # ~70% of physical: ~45 MiB on v7x, capped at 90 MiB on v5e/v6e (128 MiB).
    return min(int(cap * 0.7), 90 * 1024 * 1024)


def build_normalized_adjacency(edge_index, num_nodes):
    """GCNConv normalization: D^-1/2 (A + I) D^-1/2 (dense, f32)."""
    src, dst = edge_index[0], edge_index[1]
    a = jnp.zeros((num_nodes, num_nodes), jnp.float32).at[dst, src].set(1.0)
    a = jnp.maximum(a, jnp.eye(num_nodes, dtype=jnp.float32))  # self-loops
    deg = a.sum(axis=1)
    dinv = jnp.where(deg > 0, 1.0 / jnp.sqrt(deg), 0.0)
    return dinv[:, None] * a * dinv[None, :]


def _pad2d(x, rows, cols):
    r, c = x.shape
    return jnp.pad(x, ((0, rows - r), (0, cols - c)))


def _resident_geometry(n, budget):
    """(n_pad, tm) for the fully-feature-resident path, or None if too big."""
    cands = (256, 512) if n <= 1024 else (512, 256)
    for tm in cands:
        n_pad = _round_up(n, 2 * tm)          # rows = n_pad // tm is even (>= 2)
        need = (2 * tm * n_pad * 2            # A row blocks (bf16, double-buffered)
                + 2 * n_pad * LANE * 2        # resident features (bf16)
                + 2 * tm * LANE * 4           # output blocks
                + 2 * LANE * LANE * 2         # W2
                + (2 << 20))                  # margin
        if need <= budget:
            return n_pad, tm
    return None


def _log_softmax_masked(z, num_classes):
    """log_softmax over the first `num_classes` lanes; padded lanes -> 0."""
    lane = jax.lax.broadcasted_iota(jnp.int32, z.shape, 1)
    valid = lane < num_classes
    zm = jnp.where(valid, z, -jnp.inf)
    m = jnp.max(zm, axis=-1, keepdims=True)
    e = jnp.where(valid, jnp.exp(z - m), 0.0)
    lse = jnp.log(jnp.sum(e, axis=-1, keepdims=True)) + m
    return jnp.where(valid, z - lse, 0.0)


# ----------------------------------------------------------------------------
# resident-path kernels: one (tm, n_pad) x (n_pad, LANE) dot per grid step
# ----------------------------------------------------------------------------
def layer1_resident_kernel(a_ref, xw_ref, b1_ref, w2_ref, out_ref):
    acc = jnp.dot(a_ref[...], xw_ref[...], preferred_element_type=jnp.float32)
    h = jnp.maximum(acc + b1_ref[...], 0.0)
    out_ref[...] = jnp.dot(h.astype(w2_ref.dtype), w2_ref[...],
                           preferred_element_type=jnp.float32).astype(out_ref.dtype)


def layer2_resident_kernel(a_ref, hw_ref, b2_ref, out_ref, *, num_classes):
    z = jnp.dot(a_ref[...], hw_ref[...],
                preferred_element_type=jnp.float32) + b2_ref[...]
    out_ref[...] = _log_softmax_masked(z, num_classes).astype(out_ref.dtype)


def _resident_call(kernel, a_pad, feat, bias, extra, out_dtype, tm,
                   transcendentals, vmem_limit):
    n_pad = a_pad.shape[0]
    rows = n_pad // tm

    in_arrays = [a_pad, feat, bias] + list(extra)
    in_specs = [
        pl.BlockSpec((tm, n_pad), lambda i: (i, 0)),      # A row block
        pl.BlockSpec((n_pad, LANE), lambda i: (0, 0)),    # features: fully resident
        pl.BlockSpec((1, LANE), lambda i: (0, 0)),        # bias
    ]
    if extra:                                             # W2 (layer 1 only)
        in_specs.append(pl.BlockSpec((LANE, LANE), lambda i: (0, 0)))

    flops = 2 * n_pad * n_pad * LANE + (2 * n_pad * LANE * LANE if extra else 0)
    bytes_accessed = (n_pad * n_pad * 2 + n_pad * LANE * 2
                      + n_pad * LANE * jnp.dtype(out_dtype).itemsize
                      + (LANE * LANE * 2 if extra else 0))

    return pl.pallas_call(
        kernel,
        out_shape=jax.ShapeDtypeStruct((n_pad, LANE), out_dtype),
        grid_spec=pltpu.PrefetchScalarGridSpec(
            num_scalar_prefetch=0,
            grid=(rows,),
            in_specs=in_specs,
            out_specs=pl.BlockSpec((tm, LANE), lambda i: (i, 0)),
        ),
        compiler_params=pltpu.CompilerParams(
            dimension_semantics=("parallel",),
            vmem_limit_bytes=int(vmem_limit),
        ),
        cost_estimate=pl.CostEstimate(
            flops=int(flops),
            transcendentals=int(transcendentals),
            bytes_accessed=int(bytes_accessed),
        ),
    )(*in_arrays)


# ----------------------------------------------------------------------------
# sparse-tiled fallback: scalar-prefetched nonzero-tile lists, skip empty tiles
# ----------------------------------------------------------------------------
def layer1_sparse_kernel(kt_ref, kcnt_ref, a_ref, xw_ref, b1_ref, w2_ref,
                         out_ref, acc_ref):
    i = pl.program_id(0)
    j = pl.program_id(1)

    @pl.when(j == 0)
    def _():
        acc_ref[...] = jnp.zeros_like(acc_ref)

    @pl.when(j < kcnt_ref[i])           # padded steps: skip dot (and no re-DMA)
    def _():
        acc_ref[...] += jnp.dot(a_ref[...], xw_ref[...],
                                preferred_element_type=jnp.float32)

    @pl.when(j == pl.num_programs(1) - 1)
    def _():
        h = jnp.maximum(acc_ref[...] + b1_ref[...], 0.0)
        out_ref[...] = jnp.dot(h.astype(w2_ref.dtype), w2_ref[...],
                               preferred_element_type=jnp.float32).astype(out_ref.dtype)


def layer2_sparse_kernel(kt_ref, kcnt_ref, a_ref, hw_ref, b2_ref,
                         out_ref, acc_ref, *, num_classes):
    i = pl.program_id(0)
    j = pl.program_id(1)

    @pl.when(j == 0)
    def _():
        acc_ref[...] = jnp.zeros_like(acc_ref)

    @pl.when(j < kcnt_ref[i])
    def _():
        acc_ref[...] += jnp.dot(a_ref[...], hw_ref[...],
                                preferred_element_type=jnp.float32)

    @pl.when(j == pl.num_programs(1) - 1)
    def _():
        z = acc_ref[...] + b2_ref[...]
        out_ref[...] = _log_softmax_masked(z, num_classes).astype(out_ref.dtype)


def _build_tile_metadata(a_hat_pad_f32, tm, tk):
    """Per row tile: compacted ascending list of nonzero K-tile indices + counts."""
    n_pad = a_hat_pad_f32.shape[0]
    rows, nk = n_pad // tm, n_pad // tk
    blocks = a_hat_pad_f32.reshape(rows, tm, nk, tk)
    mask = jnp.any(blocks != 0.0, axis=(1, 3))                        # (rows, nk)
    counts = jnp.sum(mask, axis=1).astype(jnp.int32)                  # (rows,)
    max_k = max(int(jnp.max(counts)), 1)
    ids = jnp.where(mask, jnp.arange(nk, dtype=jnp.int32)[None, :], jnp.int32(nk))
    ids = jnp.sort(ids, axis=1)[:, :max_k]                            # nonzero tiles first
    j_idx = jnp.arange(max_k, dtype=jnp.int32)[None, :]
    last = jnp.take_along_axis(ids, jnp.maximum(counts - 1, 0)[:, None], axis=1)
    kt = jnp.where(j_idx < counts[:, None], ids, last)                # repeat last -> no re-DMA
    kt = jnp.minimum(kt, nk - 1)                                      # all-zero row tile safety
    return kt, counts, max_k


def _sparse_call(kernel, kt, kcnt, a_pad, feat, bias, extra, out_dtype, tm, tk,
                 transcendentals, vmem_limit):
    n_pad = a_pad.shape[0]
    rows = n_pad // tm
    max_k = kt.shape[1]

    in_arrays = [kt, kcnt, a_pad, feat, bias] + list(extra)
    in_specs = [
        pl.BlockSpec((tm, tk), lambda i, j, kt_r, kc_r: (i, kt_r[i, j])),   # nonzero A tiles only
        pl.BlockSpec((tk, LANE), lambda i, j, kt_r, kc_r: (kt_r[i, j], 0)),
        pl.BlockSpec((1, LANE), lambda i, j, kt_r, kc_r: (0, 0)),
    ]
    if extra:                                                               # W2 (layer 1 only)
        in_specs.append(pl.BlockSpec((LANE, LANE), lambda i, j, kt_r, kc_r: (0, 0)))

    nnz_tiles = int(jnp.sum(kcnt))
    flops = 2 * nnz_tiles * tm * tk * LANE + (2 * n_pad * LANE * LANE if extra else 0)
    bytes_accessed = (nnz_tiles * tm * tk * 2 + nnz_tiles * tk * LANE * 2
                      + n_pad * LANE * jnp.dtype(out_dtype).itemsize)

    return pl.pallas_call(
        kernel,
        out_shape=jax.ShapeDtypeStruct((n_pad, LANE), out_dtype),
        grid_spec=pltpu.PrefetchScalarGridSpec(
            num_scalar_prefetch=2,
            grid=(rows, max_k),
            in_specs=in_specs,
            out_specs=pl.BlockSpec((tm, LANE), lambda i, j, kt_r, kc_r: (i, 0)),
            scratch_shapes=[pltpu.VMEM((tm, LANE), jnp.float32)],
        ),
        compiler_params=pltpu.CompilerParams(
            dimension_semantics=("parallel", "arbitrary"),
            vmem_limit_bytes=int(vmem_limit),
        ),
        cost_estimate=pl.CostEstimate(
            flops=int(flops),
            transcendentals=int(transcendentals),
            bytes_accessed=int(bytes_accessed),
        ),
    )(*in_arrays)


# ----------------------------------------------------------------------------
# forward
# ----------------------------------------------------------------------------
def gcn_forward(x, edge_index, w1, b1, w2, b2, *, force_sparse=False,
                sparse_tm=512, sparse_tk=1024):
    n = x.shape[0]
    num_classes = w2.shape[1]
    budget = _vmem_budget_bytes()

    geo = None if force_sparse else _resident_geometry(n, budget)
    if geo is not None:
        n_pad, tm = geo
        tk = None
    else:
        tm, tk = sparse_tm, sparse_tk
        n_pad = _round_up(n, math.lcm(2 * tm, tk))   # rows even, divisible by tk

    # ---- plain-JAX glue: normalized adjacency, hoisted X @ W1, padding / casts
    a_hat = build_normalized_adjacency(edge_index, n)          # (n, n) f32
    a_hat_pad = _pad2d(a_hat, n_pad, n_pad)
    a_pad = a_hat_pad.astype(jnp.bfloat16)
    xw1_pad = _pad2d(x @ w1, n_pad, LANE).astype(jnp.bfloat16)  # hoisted, tiny
    b1_pad = _pad2d(b1.reshape(1, -1), 1, LANE).astype(jnp.float32)
    w2_pad = _pad2d(w2, LANE, LANE).astype(jnp.bfloat16)
    b2_pad = _pad2d(b2.reshape(1, -1), 1, LANE).astype(jnp.float32)

    k2_res = functools.partial(layer2_resident_kernel, num_classes=num_classes)
    k2_sp = functools.partial(layer2_sparse_kernel, num_classes=num_classes)

    if geo is not None:
        hw2 = _resident_call(layer1_resident_kernel, a_pad, xw1_pad, b1_pad,
                             (w2_pad,), jnp.bfloat16, tm, 0, budget)
        logp = _resident_call(k2_res, a_pad, hw2, b2_pad, (),
                              jnp.bfloat16, tm, n_pad * LANE, budget)
    else:
        kt, kcnt, _ = _build_tile_metadata(a_hat_pad, tm, tk)
        hw2 = _sparse_call(layer1_sparse_kernel, kt, kcnt, a_pad, xw1_pad,
                           b1_pad, (w2_pad,), jnp.bfloat16, tm, tk, 0, budget)
        logp = _sparse_call(k2_sp, kt, kcnt, a_pad, hw2, b2_pad, (),
                            jnp.bfloat16, tm, tk, n_pad * LANE, budget)

    return logp[:n, :num_classes].astype(jnp.float32)


# ----------------------------------------------------------------------------
# references
# ----------------------------------------------------------------------------
def jax_reference_f32(x, edge_index, w1, b1, w2, b2):
    """Pure f32 module semantics."""
    n = x.shape[0]
    a = build_normalized_adjacency(edge_index, n)
    h = jnp.maximum(a @ (x @ w1) + b1, 0.0)
    z = a @ (h @ w2) + b2
    return jax.nn.log_softmax(z, axis=1)


def matched_reference(x, edge_index, w1, b1, w2, b2):
    """Reference applying the same bf16 rounding as the kernel path."""
    n = x.shape[0]
    a = build_normalized_adjacency(edge_index, n)
    a = a.astype(jnp.bfloat16).astype(jnp.float32)
    xw1 = (x @ w1).astype(jnp.bfloat16).astype(jnp.float32)
    h = jnp.maximum(a @ xw1 + b1, 0.0)
    w2b = w2.astype(jnp.bfloat16).astype(jnp.float32)
    hw2 = (h.astype(jnp.bfloat16).astype(jnp.float32) @ w2b)
    hw2 = hw2.astype(jnp.bfloat16).astype(jnp.float32)
    z = a @ hw2 + b2
    return jax.nn.log_softmax(z, axis=1)


# ----------------------------------------------------------------------------
# demo / test
# ----------------------------------------------------------------------------
if __name__ == "__main__":
    # Small synthetic stand-in for Cora: N nodes, F input features,
    # hidden=16 (as in the module), C classes.
    N, E, F_IN, HID, C = 64, 256, 32, 16, 8

    key = jax.random.PRNGKey(0)
    k_src, k_dst, k_x, k_w1, k_b1, k_w2, k_b2 = jax.random.split(key, 7)

    src = jax.random.randint(k_src, (E,), 0, N)
    dst = jax.random.randint(k_dst, (E,), 0, N)
    edge_index = jnp.stack([src, dst], axis=0)

    x = jax.random.normal(k_x, (N, F_IN), jnp.float32)
    w1 = jax.random.normal(k_w1, (F_IN, HID), jnp.float32) * (1.0 / jnp.sqrt(F_IN))
    b1 = jax.random.normal(k_b1, (HID,), jnp.float32) * 0.1
    w2 = jax.random.normal(k_w2, (HID, C), jnp.float32) * (1.0 / jnp.sqrt(HID))
    b2 = jax.random.normal(k_b2, (C,), jnp.float32) * 0.1

    ref_m = matched_reference(x, edge_index, w1, b1, w2, b2)
    ref_f32 = jax_reference_f32(x, edge_index, w1, b1, w2, b2)

    # Primary path: features fully VMEM-resident, single row-tile grid axis.
    out = jax.block_until_ready(gcn_forward(x, edge_index, w1, b1, w2, b2))
    assert out.shape == (N, C)
    assert jnp.allclose(out, ref_m, atol=3e-2, rtol=3e-2), \
        "resident path: mismatch vs bf16-matched reference"
    assert jnp.allclose(out, ref_f32, atol=0.15, rtol=0.15), \
        "resident path: mismatch vs f32 reference"

    # Large-graph fallback: sparse-tiled path with scalar-prefetched
    # nonzero-tile lists (forced here with small tiles so zero A tiles
    # really get skipped).
    out_s = jax.block_until_ready(
        gcn_forward(x, edge_index, w1, b1, w2, b2,
                    force_sparse=True, sparse_tm=256, sparse_tk=128))
    assert out_s.shape == (N, C)
    assert jnp.allclose(out_s, ref_m, atol=3e-2, rtol=3e-2), \
        "sparse path: mismatch vs bf16-matched reference"
    assert jnp.allclose(out_s, ref_f32, atol=0.15, rtol=0.15), \
        "sparse path: mismatch vs f32 reference"

    print("KERNEL_OK")
</pallas_src>

<mosaic_0001>
module attributes {stable_mosaic.version = 11 : i64} {
  func.func @layer1_resident_kernel(%arg0: i32, %arg1: memref<256x512xbf16, #tpu.memory_space<vmem>>, %arg2: memref<512x128xbf16, #tpu.memory_space<vmem>>, %arg3: memref<1x128xf32, #tpu.memory_space<vmem>>, %arg4: memref<128x128xbf16, #tpu.memory_space<vmem>>, %arg5: memref<256x128xbf16, #tpu.memory_space<vmem>>) attributes {dimension_semantics = [#tpu.dimension_semantics<parallel>], iteration_bounds = array<i64: 2>, scalar_prefetch = 0 : i64, scratch_operands = 0 : i64, tpu.core_type = #tpu.core_type<tc>, window_params = [{transform_indices = @transform_0, window_bounds = array<i64: 256, 512>}, {pipeline_mode = #tpu.pipeline_mode<synchronous>, transform_indices = @transform_1, window_bounds = array<i64: 512, 128>}, {pipeline_mode = #tpu.pipeline_mode<synchronous>, transform_indices = @transform_2, window_bounds = array<i64: 1, 128>}, {pipeline_mode = #tpu.pipeline_mode<synchronous>, transform_indices = @transform_3, window_bounds = array<i64: 128, 128>}, {transform_indices = @transform_4, window_bounds = array<i64: 256, 128>}]} {
    %c0 = arith.constant 0 : index
    %c0_0 = arith.constant 0 : index
    %0 = vector.load %arg1[%c0, %c0_0] : memref<256x512xbf16, #tpu.memory_space<vmem>>, vector<256x512xbf16>
    %c0_1 = arith.constant 0 : index
    %c0_2 = arith.constant 0 : index
    %1 = vector.load %arg2[%c0_1, %c0_2] : memref<512x128xbf16, #tpu.memory_space<vmem>>, vector<512x128xbf16>
    %cst = arith.constant dense<0.000000e+00> : vector<256x128xf32>
    %2 = tpu.matmul %0, %1, %cst {dimension_numbers = #tpu.dot_dimension_numbers<[1], [0], [0], [1], [0, 0, 1, 1], [], []>} : vector<256x512xbf16>, vector<512x128xbf16>, vector<256x128xf32> -> vector<256x128xf32>
    %c0_3 = arith.constant 0 : index
    %c0_4 = arith.constant 0 : index
    %3 = vector.load %arg3[%c0_3, %c0_4] : memref<1x128xf32, #tpu.memory_space<vmem>>, vector<1x128xf32>
    %4 = vector.broadcast %3 : vector<1x128xf32> to vector<256x128xf32>
    %5 = arith.addf %2, %4 : vector<256x128xf32>
    %cst_5 = arith.constant 0.000000e+00 : f32
    %6 = vector.broadcast %cst_5 : f32 to vector<256x128xf32>
    %7 = arith.maximumf %5, %6 : vector<256x128xf32>
    %8 = arith.truncf %7 : vector<256x128xf32> to vector<256x128xbf16>
    %c0_6 = arith.constant 0 : index
    %c0_7 = arith.constant 0 : index
    %9 = vector.load %arg4[%c0_6, %c0_7] : memref<128x128xbf16, #tpu.memory_space<vmem>>, vector<128x128xbf16>
    %cst_8 = arith.constant dense<0.000000e+00> : vector<256x128xf32>
    %10 = tpu.matmul %8, %9, %cst_8 {dimension_numbers = #tpu.dot_dimension_numbers<[1], [0], [0], [1], [0, 0, 1, 1], [], []>} : vector<256x128xbf16>, vector<128x128xbf16>, vector<256x128xf32> -> vector<256x128xf32>
    %11 = arith.truncf %10 : vector<256x128xf32> to vector<256x128xbf16>
    %c0_9 = arith.constant 0 : index
    %c0_10 = arith.constant 0 : index
    %12 = vector.load %arg5[%c0_9, %c0_10] : memref<256x128xbf16, #tpu.memory_space<vmem>>, vector<256x128xbf16>
    tpu.vector_store %arg5[%c0_9, %c0_10], %11 {strides = array<i32>} : memref<256x128xbf16, #tpu.memory_space<vmem>>, vector<256x128xbf16>,
    return
  }
  func.func @transform_0(%arg0: i32) -> (i32, i32) {
    %c0_i32 = arith.constant 0 : i32
    %c0_i32_0 = arith.constant 0 : i32
    return %arg0, %c0_i32 : i32, i32
  }
  func.func @transform_1(%arg0: i32) -> (i32, i32) {
    %c0_i32 = arith.constant 0 : i32
    %c0_i32_0 = arith.constant 0 : i32
    %c0_i32_1 = arith.constant 0 : i32
    return %c0_i32, %c0_i32_0 : i32, i32
  }
  func.func @transform_2(%arg0: i32) -> (i32, i32) {
    %c0_i32 = arith.constant 0 : i32
    %c0_i32_0 = arith.constant 0 : i32
    %c0_i32_1 = arith.constant 0 : i32
    return %c0_i32, %c0_i32_0 : i32, i32
  }
  func.func @transform_3(%arg0: i32) -> (i32, i32) {
    %c0_i32 = arith.constant 0 : i32
    %c0_i32_0 = arith.constant 0 : i32
    %c0_i32_1 = arith.constant 0 : i32
    return %c0_i32, %c0_i32_0 : i32, i32
  }
  func.func @transform_4(%arg0: i32) -> (i32, i32) {
    %c0_i32 = arith.constant 0 : i32
    %c0_i32_0 = arith.constant 0 : i32
    return %arg0, %c0_i32 : i32, i32
  }
}

</mosaic_0001>

<bundles_post_ra>
// kernel: tpu_custom_call.1
= control target key start
LH: loop header
LB: loop body
LE: loop exit
PB: predicated region body
PF: predicated region fallthrough
CT: control target
= control target key end

     0   :  { %9 = vsyncpa [#allocation3], 0  ;;  %s2957_s0 = inlined_call_operand.hbm [shape: bf16[512,512], index: 0, kind: input, shape index: {}]   ;;  %s2958_s1 = inlined_call_operand.hbm [shape: bf16[512,128], index: 1, kind: input, shape index: {}]   ;;  %s2959_s2 = inlined_call_operand.vmem [shape: f32[1,128], index: 2, kind: input, shape index: {}]   ;;  %s2960_s3 = inlined_call_operand.hbm [shape: bf16[128,128], index: 3, kind: input, shape index: {}]   ;;  %s2961_s4 = inlined_call_operand.hbm [shape: bf16[512,128], index: 4, kind: output, shape index: {}]  }
   0x1   :  { %11 = vsyncpa [#allocation3 + $0x1], 0 }
   0x2   :  { %12 = vsyncpa [#allocation6], 0 }
   0x3   :  { %13 = vsyncpa [#allocation4], 0 }
   0x4   :  { %15 = vsyncpa [#allocation4 + $0x1], 0  ;;  %s2557_s15 = smov 0   ;;  %s2559_s16 = smov 0  }
   0x5   :  { %s2561_s17 = smov 0   ;;  %s2563_s18 = smov 0  }
   0x6 LB: > { %s2578_s19 = sadd.s32 4294967295, %s2522_s18   ;;  %s1627_s20 = sadd.s32 4294967294, %s2522_s18   ;;  %s2522_s18 = sphi %s2563_s18, %s2971_s18   ;;  %s2518_s17 = sphi %s2561_s17, %s2970_s17   ;;  %s2514_s16 = sphi %s2559_s16, %s2969_s16   ;;  %s2510_s15 = sphi %s2557_s15, %s2968_s15  }
   0x7   : > { %p41_p0 = scmp.ne.s32.totalorder %s2514_s16, %s2510_s15  ;;  %p42_p1 = scmp.eq.s32.totalorder %s2578_s19, 0 }
   0x8   : > { %p128_p2 = scmp.eq.s32.totalorder %s2578_s19, 1  ;;  %p134_p3 = scmp.eq.s32.totalorder %s1627_s20, 1 }
   0x9   : > { %p2587_p4 = por %p42_p1, %p41_p0  ;;  %p1628_p5 = scmp.ge.s32.totalorder %s2522_s18, 1 }
   0xa   : > { %p2592_p6 = por %p134_p3, %p41_p0  ;;  %p141_p7 = scmp.lt.s32.totalorder %s2522_s18, 3 }
   0xb   : > { %s152_s25 = sshll.u32 %s2958_s1, 4  ;;  %s2524_s27 = smov [#allocation5]   ;;  %s153_s25 = int_to_ptr.hbm [resolvable:$true] %s152_s25 }
   0xc   : > { %p2600_p8 = pnand %p1628_p5, %p141_p7  ;;  %s154_s28 = sshll.u32 %s2524_s27, 4  ;;  %s155_s28 = int_to_ptr.vmem [resolvable:$true] %s154_s28 }
   0xd   : > { %s169_s5 = sshll.u32 %s2960_s3, 4  ;;  %s2525_s6 = smov 64   ;;  %s170_s5 = int_to_ptr.hbm [resolvable:$true] %s169_s5 }
   0xe   : > { %p2300_p9 = pneg %p2600_p8  ;;  %s2526_s7 = smov 4  }
   0xf   : > { %s2527_s8 = smov [#allocation7]   ;;  %s2613_s10 = sadd.s32 1, %s2522_s18  }
  0x10   : > { %p2301_p10 = pnand %p2300_p9, %p42_p1  ;;  %s171_s9 = sshll.u32 %s2527_s8, 4  ;;  %s172_s9 = int_to_ptr.vmem [resolvable:$true] %s171_s9 }
  0x11   : > { %s28_s11 = sadd.s32 1, %s2518_s17  ;;  %s25_s12 = ssub.s32 %s2522_s18, %s2613_s10 }
  0x12   : > { %2303 = dma.hbm_to_vmem [thread:$0]  (!%p2301_p10), %s153_s25, 4096, %s155_s28, [#allocation6], %s2525_s6, %s2525_s6, %s2526_s7  }
  0x13   : > { %2306 = dma.hbm_to_vmem [thread:$0]  (!%p2301_p10), %s170_s5, 1024, %s172_s9, [#allocation6], %s2525_s6, %s2525_s6, %s2526_s7  }
  0x14   : > { %p35_p12 = scmp.ne.s32.totalorder %s2518_s17, %s2514_s16  ;;  %p26_p13 = scmp.eq.s32.totalorder %s25_s12, 0 }
  0x15   : > { %p36_p0 = scmp.eq.s32.totalorder %s2522_s18, 0  ;;  %p2317_p5 = scmp.lt.s32.totalorder %s2522_s18, 2 }
  0x16   : > { %p2623_p3 = por %p128_p2, %p35_p12  ;;  %s185_s20 = sand.u32 1, %s2518_s17  }
  0x17   : > { %s2629_s14 = scalar_select %p26_p13, %s2518_s17, %s28_s11  }
  0x18   : > { %p37_p7 = por %p36_p0, %p35_p12  ;;  %s1632_s23 = sshll.u32 %s185_s20, 9 }
  0x19   : > { %s2063_s24 = sshll.u32 %s2522_s18, 9  ;;  %s189_s29 = scalar_lea.vmem [#allocation2], %s1632_s23 }
  0x1a   : > { %s195_s28 = scalar_lea.hbm %s2957_s0, %s2063_s24  ;;  %s198_s30 = sshll.u32 %s189_s29, 4  ;;  %s199_s30 = int_to_ptr.vmem [resolvable:$true] %s198_s30 }
  0x1b   : > { %s196_s5 = sshll.u32 %s195_s28, 4  ;;  %p2636_p2 = pnand %p2317_p5, %p37_p7  ;;  %s197_s5 = int_to_ptr.hbm [resolvable:$true] %s196_s5 }
  0x1c   : > { %s186_s7 = scalar_lea.sflag [#allocation3], %s185_s20  ;;  %s2422_s8 = sshra.s32 %s197_s5, 4  ;;  %s2423_s8 = int_to_ptr.hbm [resolvable:$true] %s2422_s8 }
  0x1d   : > { %s2424_s9 = scalar_lea.hbm %s2423_s8, 512  ;;  %p2426_p10 = pneg %p2636_p2 }
  0x1e   : > { %p2425_p9 = scmp.ne.s32.totalorder %s2423_s8, %s2424_s9  ;;  %s2429_s23 = scalar_lea.hbm %s2957_s0, 1024 }
  0x1f   : > { %p2430_p0 = scmp.lt.s32.totalorder %s2423_s8, %s2957_s0  ;;  %p2431_p5 = scmp.lt.s32.totalorder %s2429_s23, %s2424_s9 }
  0x20   : > { %p2427_p12 = pnand %p2426_p10, %p2425_p9 }
  0x21   : > { %p2432_p7 = por %p2431_p5, %p2430_p0 }
  0x22   : > { %p2428_p13 = pneg %p2427_p12 }
  0x24   : > { %p2433_p11 = pnand %p2432_p7, %p2428_p13 }
  0x26   : > { %2436 = shalt.err (!%p2433_p11)
}
  0x27   : > { %s2528_s20 = smov 256   ;;  %s2529_s27 = smov 16  }
  0x28   : > { %2310 = dma.hbm_to_vmem [thread:$0]  (!%p2636_p2), %s197_s5, 8192, %s199_s30, %s186_s7, %s2528_s20, %s2528_s20, %s2529_s27  }
  0x29   : > { %210 = sbr.rel (%p2600_p8) target bundleno = 674 (0x2a2), region = 36  ;;  %s2653_s28 = sand.u32 (!%p2600_p8), 1, %s2514_s16  }
  0x2a   : > { %s1637_s29 = sshll.u32 (!%p2600_p8), %s2653_s28, 9  ;;  %s213_s8 = scalar_lea.sflag (!%p2600_p8), [#allocation3], %s2653_s28 }
  0x2b   : > { %s2657_s9 = scalar_lea.vmem (!%p2600_p8), [#allocation2], %s1637_s29 }
  0x2e   : > { %2497 = dma.done.wait (%p2587_p4), %s213_s8, 8192  }
  0x2f   : > { %2499 = vsyncadd (%p2587_p4), %s213_s8, 4294959104 }
  0x30   : > { %2501 = dma.done.wait (%p42_p1), [#allocation6], 5120  }
  0x31   : > { %2503 = vsyncadd (%p42_p1), [#allocation6], 4294962176  ;;  %v2135_v0 = vld [vmem:[#allocation5 + $0x38] sm:$0xff]  ;;  %v2134_v1 = vld [vmem:[#allocation5 + $0x30] sm:$0xff]  ;;  %s1640_s30 = sshll.u32 %s2653_s28, 7  ;;  %s2168_s6 = sshll.u32 %s2578_s19, 7 }
  0x32   : > { %2264 = vmatpush.bf16.msra.mxu1 %v2135_v0  ;;  %2265 = vmatpush.bf16.msra.mxu2 %v2135_v0  ;;  %v2133_v2 = vld [vmem:[#allocation5 + $0x28] sm:$0xff]  ;;  %v2132_v3 = vld [vmem:[#allocation5 + $0x20] sm:$0xff]  ;;  %v2131_v4 = vld [vmem:[#allocation5 + $0x18] sm:$0xff]  ;;  %s2881_s5 = scalar_lea.vmem [#allocation8], %s1640_s30  ;;  %s1531_s12 = scalar_lea.hbm %s2961_s4, %s2168_s6 }
  0x33   : > { %2266 = vmatpush.bf16.msra.mxu3 %v2135_v0  ;;  %898 = vmatpush.bf16.msra.mxu0 %v2135_v0  ;;  %v2130_v5 = vld [vmem:[#allocation5 + $0x10] sm:$0xff]  ;;  %v2129_v6 = vld [vmem:[#allocation5 + $0x8] sm:$0xff]  ;;  %v2128_v7 = vld [vmem:[#allocation5] sm:$0xff]  ;;  %s1532_s23 = sshll.u32 %s2881_s5, 4  ;;  %s1534_s24 = sshll.u32 %s1531_s12, 4  ;;  %s1533_s23 = int_to_ptr.vmem [resolvable:$true] %s1532_s23  ;;  %s1535_s24 = int_to_ptr.hbm [resolvable:$true] %s1534_s24 }
  0x34   : > { %v1707_v8 = vld [vmem:[%s2657_s9 + $0x80] sm:$0xf]  ;;  %v2082_v9 = vld [vmem:[%s2657_s9 + $0x8c] sm:$0xf0]  ;;  %v2151_v14 = vld [vmem:[#allocation5 + $0xb8] sm:$0xff]  ;;  %s1520_s25 = scalar_lea.sflag [#allocation4], %s2653_s28 }
  0x35   : > { %v1771_v10 = vld [vmem:[%s2657_s9 + $0x100] sm:$0xf]  ;;  %v2098_v11 = vld [vmem:[%s2657_s9 + $0x10c] sm:$0xf0]  ;;  %v2159_v15 = vld [vmem:[#allocation5 + $0xf8] sm:$0xff]  ;;  %v1708_v17 = vor.u32 %v2082_v9, %v1707_v8  ;;  %s2466_s20 = sshra.s32 %s1535_s24, 4  ;;  %s2467_s20 = int_to_ptr.hbm [resolvable:$true] %s2466_s20 }
  0x36   : > { %2267 = vmatpush.bf16.msra.mxu1 %v2134_v1  ;;  %2268 = vmatpush.bf16.msra.mxu2 %v2134_v1  ;;  %v1835_v12 = vld [vmem:[%s2657_s9 + $0x180] sm:$0xf]  ;;  %v2114_v13 = vld [vmem:[%s2657_s9 + $0x18c] sm:$0xf0]  ;;  %v2143_v16 = vld [vmem:[#allocation5 + $0x78] sm:$0xff]  ;;  %v1772_v18 = vor.u32 %v2098_v11, %v1771_v10  ;;  %s2468_s27 = scalar_lea.hbm %s2467_s20, 128  ;;  %p2473_p11 = scmp.lt.s32.totalorder %s2467_s20, %s2961_s4 }
  0x37   : > { %2269 = vmatpush.bf16.msra.mxu3 %v2134_v1  ;;  %899 = vmatpush.bf16.msra.mxu0 %v2134_v1  ;;  %v1836_v19 = vor.u32 %v2114_v13, %v1835_v12  ;;  %v2150_v20 = vld [vmem:[#allocation5 + $0xb0] sm:$0xff]  ;;  %v2149_v23 = vld [vmem:[#allocation5 + $0xa8] sm:$0xff]  ;;  %v2148_v26 = vld [vmem:[#allocation5 + $0xa0] sm:$0xff]  ;;  %p2469_p1 = scmp.ne.s32.totalorder %s2467_s20, %s2468_s27  ;;  %s2472_s8 = scalar_lea.hbm %s2961_s4, 256 }
  0x38   : > { %v2158_v21 = vld [vmem:[#allocation5 + $0xf0] sm:$0xff]  ;;  %v2157_v24 = vld [vmem:[#allocation5 + $0xe8] sm:$0xff]  ;;  %v2156_v27 = vld [vmem:[#allocation5 + $0xe0] sm:$0xff]  ;;  %p2474_p2 = scmp.lt.s32.totalorder %s2472_s8, %s2468_s27 }
  0x39   : > { %v2142_v22 = vld [vmem:[#allocation5 + $0x70] sm:$0xff]  ;;  %v2141_v25 = vld [vmem:[#allocation5 + $0x68] sm:$0xff]  ;;  %v2140_v28 = vld [vmem:[#allocation5 + $0x60] sm:$0xff]  ;;  %p2470_p4 = pnand %p2469_p1, %p2623_p3 }
  0x3a   : > { %2270 = vmatpush.bf16.msra.mxu1 %v2133_v2  ;;  %2271 = vmatpush.bf16.msra.mxu2 %v2133_v2  ;;  %v1723_v29 = vld [vmem:[%s2657_s9 + $0xa0] sm:$0xf]  ;;  %v2086_v30 = vld [vmem:[%s2657_s9 + $0xac] sm:$0xf0]  ;;  %v2147_v35 = vld [vmem:[#allocation5 + $0x98] sm:$0xff]  ;;  %p2475_p9 = por %p2474_p2, %p2473_p11 }
  0x3b   : > { %2272 = vmatpush.bf16.msra.mxu3 %v2133_v2  ;;  %900 = vmatpush.bf16.msra.mxu0 %v2133_v2  ;;  %v1787_v31 = vld [vmem:[%s2657_s9 + $0x120] sm:$0xf]  ;;  %v2102_v32 = vld [vmem:[%s2657_s9 + $0x12c] sm:$0xf0]  ;;  %v2155_v36 = vld [vmem:[#allocation5 + $0xd8] sm:$0xff]  ;;  %v1724_v38 = vor.u32 %v2086_v30, %v1723_v29  ;;  %p2471_p8 = pneg %p2470_p4 }
  0x3c   : > { %v1851_v33 = vld [vmem:[%s2657_s9 + $0x1a0] sm:$0xf]  ;;  %v2118_v34 = vld [vmem:[%s2657_s9 + $0x1ac] sm:$0xf0]  ;;  %v2139_v37 = vld [vmem:[#allocation5 + $0x58] sm:$0xff]  ;;  %v1788_v39 = vor.u32 %v2102_v32, %v1787_v31 }
  0x3d   : > { %v1852_v40 = vor.u32 %v2118_v34, %v1851_v33  ;;  %v2146_v41 = vld [vmem:[#allocation5 + $0x90] sm:$0xff]  ;;  %v2145_v44 = vld [vmem:[#allocation5 + $0x88] sm:$0xff]  ;;  %v1643_v45 = vld [vmem:[%s2657_s9] sm:$0xf]  ;;  %p2476_p10 = pnand %p2475_p9, %p2471_p8 }
  0x3e   : > { %2273 = vmatpush.bf16.msra.mxu1 %v2132_v3  ;;  %2274 = vmatpush.bf16.msra.mxu2 %v2132_v3  ;;  %v2154_v42 = vld [vmem:[#allocation5 + $0xd0] sm:$0xff]  ;;  %v2153_v47 = vld [vmem:[#allocation5 + $0xc8] sm:$0xff]  ;;  %v2144_v50 = vld [vmem:[#allocation5 + $0x80] sm:$0xff] }
  0x3f   : > { %2275 = vmatpush.bf16.msra.mxu3 %v2132_v3  ;;  %901 = vmatpush.bf16.msra.mxu0 %v2132_v3  ;;  %v2138_v43 = vld [vmem:[#allocation5 + $0x50] sm:$0xff]  ;;  %v2137_v48 = vld [vmem:[#allocation5 + $0x48] sm:$0xff]  ;;  %v2152_v51 = vld [vmem:[#allocation5 + $0xc0] sm:$0xff] }
  0x40   : > { %v2066_v46 = vld [vmem:[%s2657_s9 + $0xc] sm:$0xf0]  ;;  %v2136_v52 = vld [vmem:[#allocation5 + $0x40] sm:$0xff]  ;;  %v2069_v29 = vld [vmem:[%s2657_s9 + $0x2c] sm:$0xf] }
  0x41   : > { %v1644_v49 = vor.u32 %v2066_v46, %v1643_v45  ;;  %v1739_v53 = vld [vmem:[%s2657_s9 + $0xc0] sm:$0xf]  ;;  %v2090_v54 = vld [vmem:[%s2657_s9 + $0xcc] sm:$0xf0]  ;;  %v2064_v13 = vld [vmem:[%s2657_s9 + $0x4] sm:$0xf] }
  0x42   : > { %2276 = vmatpush.bf16.msra.mxu1 %v2131_v4  ;;  %2277 = vmatpush.bf16.msra.mxu2 %v2131_v4  ;;  %v1803_v55 = vld [vmem:[%s2657_s9 + $0x140] sm:$0xf]  ;;  %v2106_v56 = vld [vmem:[%s2657_s9 + $0x14c] sm:$0xf0]  ;;  %v1740_v59 = vor.u32 %v2090_v54, %v1739_v53  ;;  %v1669_v30 = vld [vmem:[%s2657_s9 + $0x38] sm:$0xf0] }
  0x43   : > { %2278 = vmatpush.bf16.msra.mxu3 %v2131_v4  ;;  %902 = vmatpush.bf16.msra.mxu0 %v2131_v4  ;;  %v1867_v57 = vld [vmem:[%s2657_s9 + $0x1c0] sm:$0xf]  ;;  %v2122_v58 = vld [vmem:[%s2657_s9 + $0x1cc] sm:$0xf0]  ;;  %v1804_v60 = vor.u32 %v2106_v56, %v1803_v55  ;;  %v1672_v33 = vor.u32 %v2069_v29, %v1669_v30  ;;  %v2072_v34 = vld [vmem:[%s2657_s9 + $0x44] sm:$0xf] }
  0x44   : > { %v1868_v61 = vor.u32 %v2122_v58, %v1867_v57  ;;  %v1659_v62 = vld [vmem:[%s2657_s9 + $0x20] sm:$0xf]  ;;  %v2070_v63 = vld [vmem:[%s2657_s9 + $0x2c] sm:$0xf0]  ;;  %v1699_v45 = vld [vmem:[%s2657_s9 + $0x68] sm:$0xf] }
  0x45   : > { %v1660_v0 = vor.u32 %v2070_v63, %v1659_v62  ;;  %v1755_v1 = vld [vmem:[%s2657_s9 + $0xe0] sm:$0xf]  ;;  %v2094_v2 = vld [vmem:[%s2657_s9 + $0xec] sm:$0xf0]  ;;  %v2079_v46 = vld [vmem:[%s2657_s9 + $0x74] sm:$0xf0] }
  0x46   : > { %2279 = vmatpush.bf16.msra.mxu1 %v2130_v5  ;;  %2280 = vmatpush.bf16.msra.mxu2 %v2130_v5  ;;  %v1819_v3 = vld [vmem:[%s2657_s9 + $0x160] sm:$0xf]  ;;  %v2110_v4 = vld [vmem:[%s2657_s9 + $0x16c] sm:$0xf0]  ;;  %v2080_v53 = vld [vmem:[%s2657_s9 + $0x84] sm:$0xf] }
  0x47   : > { %2281 = vmatpush.bf16.msra.mxu3 %v2130_v5  ;;  %903 = vmatpush.bf16.msra.mxu0 %v2130_v5  ;;  %v1883_v5 = vld [vmem:[%s2657_s9 + $0x1e0] sm:$0xf]  ;;  %v1820_v8 = vor.u32 %v2110_v4, %v1819_v3  ;;  %v2074_v11 = vld [vmem:[%s2657_s9 + $0x4c] sm:$0xf0]  ;;  %v1709_v54 = vld [vmem:[%s2657_s9 + $0x90] sm:$0xf0] }
  0x48   : > { %v1675_v10 = vld [vmem:[%s2657_s9 + $0x40] sm:$0xf]  ;;  %v1715_v55 = vld [vmem:[%s2657_s9 + $0x88] sm:$0xf]  ;;  %v2083_v56 = vld [vmem:[%s2657_s9 + $0x94] sm:$0xf0] }
  0x49   : > { %v1676_v12 = vor.u32 %v2074_v11, %v1675_v10  ;;  %v2081_v57 = vld [vmem:[%s2657_s9 + $0x8c] sm:$0xf]  ;;  %v1717_v58 = vld [vmem:[%s2657_s9 + $0x98] sm:$0xf0]  ;;  %v2166_v63 = vld [vmem:[#allocation7 + $0x30] sm:$0xff] }
  0x4a   : > { %2282 = vmatpush.bf16.msra.mxu1 %v2129_v6  ;;  %2283 = vmatpush.bf16.msra.mxu2 %v2129_v6  ;;  %v1720_v62 = vor.u32 %v2081_v57, %v1717_v58  ;;  %v2165_v3 = vld [vmem:[#allocation7 + $0x28] sm:$0xff]  ;;  %v2084_v4 = vld [vmem:[%s2657_s9 + $0xa4] sm:$0xf]  ;;  %v1773_v57 = vld [vmem:[%s2657_s9 + $0x110] sm:$0xf0] }
  0x4b   : > { %2284 = vmatpush.bf16.msra.mxu3 %v2129_v6  ;;  %904 = vmatpush.bf16.msra.mxu0 %v2129_v6  ;;  %v2126_v6 = vld [vmem:[%s2657_s9 + $0x1ec] sm:$0xf0]  ;;  %v1779_v58 = vld [vmem:[%s2657_s9 + $0x108] sm:$0xf] }
  0x4c   : > { %v1884_v9 = vor.u32 %v2126_v6, %v1883_v5  ;;  %v1725_v5 = vld [vmem:[%s2657_s9 + $0xb0] sm:$0xf0]  ;;  %v1731_v6 = vld [vmem:[%s2657_s9 + $0xa8] sm:$0xf] }
  0x4e   : > { %2285 = vmatpush.bf16.msra.mxu1 %v2128_v7  ;;  %2286 = vmatpush.bf16.msra.mxu2 %v2128_v7 }
  0x4f   : > { %2287 = vmatpush.bf16.msra.mxu3 %v2128_v7  ;;  %905 = vmatpush.bf16.msra.mxu0 %v2128_v7  ;;  %v1756_v7 = vor.u32 %v2094_v2, %v1755_v1 }
  0x51   : > { %926 = vmatmul.bf16.vlgmr.msra.gmra.mxu1 %v1708_v17  ;;  %946 = vmatmul.bf16.vlgmr.msra.gmra.mxu2 %v1772_v18  ;;  %v2065_v17 = vld [vmem:[%s2657_s9 + $0xc] sm:$0xf]  ;;  %v1653_v18 = vld [vmem:[%s2657_s9 + $0x18] sm:$0xf0] }
  0x52   : > { %1076 = vmatpush.bf16.msrb.mxu2 %v2151_v14  ;;  %987 = vmatpush.bf16.msrb.mxu1 %v2143_v16  ;;  %v1645_v14 = vld [vmem:[%s2657_s9 + $0x10] sm:$0xf0]  ;;  %v2067_v16 = vld [vmem:[%s2657_s9 + $0x14] sm:$0xf0] }
  0x53   : > { %1165 = vmatpush.bf16.msrb.mxu3 %v2159_v15  ;;  %906 = vmatmul.bf16.vlgmr.msra.gmra.mxu0 %v1644_v49  ;;  %v1651_v15 = vld [vmem:[%s2657_s9 + $0x8] sm:$0xf] }
  0x54   : > { %966 = vmatmul.bf16.vlgmr.msra.gmra.mxu3 %v1836_v19  ;;  %v1648_v19 = vor.u32 %v2064_v13, %v1645_v14 }
  0x56   : > { %1077 = vmatpush.bf16.msrb.mxu2 %v2150_v20  ;;  %988 = vmatpush.bf16.msrb.mxu1 %v2142_v22  ;;  %v1652_v20 = vor.u32 %v2067_v16, %v1651_v15  ;;  %v1691_v22 = vld [vmem:[%s2657_s9 + $0x60] sm:$0xf] }
  0x57   : > { %1166 = vmatpush.bf16.msrb.mxu3 %v2158_v21  ;;  %v1656_v21 = vor.u32 %v2065_v17, %v1653_v18  ;;  %v2164_v16 = vld [vmem:[#allocation7 + $0x20] sm:$0xff] }
  0x5a   : > { %1078 = vmatpush.bf16.msrb.mxu2 %v2149_v23  ;;  %989 = vmatpush.bf16.msrb.mxu1 %v2141_v25  ;;  %v2078_v23 = vld [vmem:[%s2657_s9 + $0x6c] sm:$0xf0]  ;;  %v2068_v25 = vld [vmem:[%s2657_s9 + $0x24] sm:$0xf] }
  0x5b   : > { %1167 = vmatpush.bf16.msrb.mxu3 %v2157_v24  ;;  %v1692_v24 = vor.u32 %v2078_v23, %v1691_v22  ;;  %v1741_v22 = vld [vmem:[%s2657_s9 + $0xd0] sm:$0xf0]  ;;  %v1747_v23 = vld [vmem:[%s2657_s9 + $0xc8] sm:$0xf] }
  0x5e   : > { %1079 = vmatpush.bf16.msrb.mxu2 %v2148_v26  ;;  %990 = vmatpush.bf16.msrb.mxu1 %v2140_v28  ;;  %v1661_v26 = vld [vmem:[%s2657_s9 + $0x30] sm:$0xf0]  ;;  %v2071_v28 = vld [vmem:[%s2657_s9 + $0x34] sm:$0xf0] }
  0x5f   : > { %1168 = vmatpush.bf16.msrb.mxu3 %v2156_v27  ;;  %v1667_v27 = vld [vmem:[%s2657_s9 + $0x28] sm:$0xf]  ;;  %v1664_v31 = vor.u32 %v2068_v25, %v1661_v26  ;;  %v2089_v25 = vld [vmem:[%s2657_s9 + $0xcc] sm:$0xf]  ;;  %v1749_v26 = vld [vmem:[%s2657_s9 + $0xd8] sm:$0xf0] }
  0x60   : > { %v1668_v32 = vor.u32 %v2071_v28, %v1667_v27 }
  0x61   : > { %931 = vmatmul.bf16.gmra.mxu1 %v1724_v38  ;;  %951 = vmatmul.bf16.gmra.mxu2 %v1788_v39  ;;  %v2073_v38 = vld [vmem:[%s2657_s9 + $0x4c] sm:$0xf]  ;;  %v1685_v39 = vld [vmem:[%s2657_s9 + $0x58] sm:$0xf0] }
  0x62   : > { %1080 = vmatpush.bf16.msrb.mxu2 %v2147_v35  ;;  %991 = vmatpush.bf16.msrb.mxu1 %v2139_v37  ;;  %v1677_v35 = vld [vmem:[%s2657_s9 + $0x50] sm:$0xf0]  ;;  %v2075_v37 = vld [vmem:[%s2657_s9 + $0x54] sm:$0xf0] }
  0x63   : > { %1169 = vmatpush.bf16.msrb.mxu3 %v2155_v36  ;;  %911 = vmatmul.bf16.gmra.mxu0 %v1660_v0  ;;  %v1683_v36 = vld [vmem:[%s2657_s9 + $0x48] sm:$0xf] }
  0x64   : > { %971 = vmatmul.bf16.gmra.mxu3 %v1852_v40  ;;  %v1680_v40 = vor.u32 %v2072_v34, %v1677_v35 }
  0x66   : > { %1081 = vmatpush.bf16.msrb.mxu2 %v2146_v41  ;;  %992 = vmatpush.bf16.msrb.mxu1 %v2138_v43  ;;  %v1684_v41 = vor.u32 %v2075_v37, %v1683_v36  ;;  %v2076_v43 = vld [vmem:[%s2657_s9 + $0x64] sm:$0xf] }
  0x67   : > { %1170 = vmatpush.bf16.msrb.mxu3 %v2154_v42  ;;  %v1688_v42 = vor.u32 %v2073_v38, %v1685_v39  ;;  %v2092_v37 = vld [vmem:[%s2657_s9 + $0xe4] sm:$0xf]  ;;  %v2161_v38 = vld [vmem:[#allocation7 + $0x8] sm:$0xff]  ;;  %v1757_v39 = vld [vmem:[%s2657_s9 + $0xf0] sm:$0xf0] }
  0x6a   : > { %1082 = vmatpush.bf16.msrb.mxu2 %v2145_v44  ;;  %993 = vmatpush.bf16.msrb.mxu1 %v2137_v48  ;;  %v1693_v44 = vld [vmem:[%s2657_s9 + $0x70] sm:$0xf0]  ;;  %v1701_v48 = vld [vmem:[%s2657_s9 + $0x78] sm:$0xf0] }
  0x6b   : > { %1171 = vmatpush.bf16.msrb.mxu3 %v2153_v47  ;;  %v2077_v47 = vld [vmem:[%s2657_s9 + $0x6c] sm:$0xf]  ;;  %v1696_v49 = vor.u32 %v2076_v43, %v1693_v44  ;;  %v1765_v43 = vld [vmem:[%s2657_s9 + $0xf8] sm:$0xf0] }
  0x6e   : > { %1083 = vmatpush.bf16.msrb.mxu2 %v2144_v50  ;;  %994 = vmatpush.bf16.msrb.mxu1 %v2136_v52  ;;  %v1700_v50 = vor.u32 %v2079_v46, %v1699_v45  ;;  %v2167_v52 = vld [vmem:[#allocation7 + $0x38] sm:$0xff]  ;;  %v1760_v46 = vor.u32 %v2092_v37, %v1757_v39 }
  0x6f   : > { %1172 = vmatpush.bf16.msrb.mxu3 %v2152_v51  ;;  %v1704_v51 = vor.u32 %v2077_v47, %v1701_v48  ;;  %1366 = vmatpush.bf16.msrb.mxu0 %v2167_v52 }
  0x71   : > { %936 = vmatmul.bf16.gmra.mxu1 %v1740_v59  ;;  %956 = vmatmul.bf16.gmra.mxu2 %v1804_v60  ;;  %v1712_v59 = vor.u32 %v2080_v53, %v1709_v54  ;;  %v1716_v60 = vor.u32 %v2083_v56, %v1715_v55  ;;  %v2096_v55 = vld [vmem:[%s2657_s9 + $0x104] sm:$0xf] }
  0x73   : > { %916 = vmatmul.bf16.gmra.mxu0 %v1676_v12  ;;  %v1728_v12 = vor.u32 %v2084_v4, %v1725_v5  ;;  %v1776_v4 = vor.u32 %v2096_v55, %v1773_v57 }
  0x74   : > { %976 = vmatmul.bf16.gmra.mxu3 %v1868_v61  ;;  %1367 = vmatpush.bf16.msrb.mxu0 %v2166_v63 }
  0x78   : > { %1368 = vmatpush.bf16.msrb.mxu0 %v2165_v3 }
  0x7c   : > { %1369 = vmatpush.bf16.msrb.mxu0 %v2164_v16 }
  0x81   : > { %941 = vmatmul.bf16.gmra.mxu1 %v1756_v7  ;;  %961 = vmatmul.bf16.gmra.mxu2 %v1820_v8  ;;  %v2087_v7 = vld [vmem:[%s2657_s9 + $0xb4] sm:$0xf0]  ;;  %v2085_v8 = vld [vmem:[%s2657_s9 + $0xac] sm:$0xf] }
  0x82   : > { %v1732_v13 = vor.u32 %v2087_v7, %v1731_v6 }
  0x83   : > { %921 = vmatmul.bf16.gmra.mxu0 %v1692_v24  ;;  %v2091_v24 = vld [vmem:[%s2657_s9 + $0xd4] sm:$0xf0] }
  0x84   : > { %981 = vmatmul.bf16.gmra.mxu3 %v1884_v9  ;;  %v1733_v9 = vld [vmem:[%s2657_s9 + $0xb8] sm:$0xf0]  ;;  %v1748_v30 = vor.u32 %v2091_v24, %v1747_v23  ;;  %v2100_v23 = vld [vmem:[%s2657_s9 + $0x124] sm:$0xf]  ;;  %v1789_v24 = vld [vmem:[%s2657_s9 + $0x130] sm:$0xf0] }
  0x85   : > { %v1736_v15 = vor.u32 %v2085_v8, %v1733_v9  ;;  %v2804_v8 = vld [vmem:[%s2959_s2] ss:$0 sm:$0xff] }
  0x91   : > { %995 = vmatmul.bf16.vlgmr.msrb.gmra.mxu1 %v1648_v19  ;;  %1084 = vmatmul.bf16.vlgmr.msrb.gmra.mxu2 %v1652_v20  ;;  %v2163_v20 = vld [vmem:[#allocation7 + $0x18] sm:$0xff] }
  0x92   : > { %1370 = vmatpush.bf16.msrb.mxu0 %v2163_v20 }
  0x94   : > { %1173 = vmatmul.bf16.vlgmr.msrb.gmra.mxu3 %v1656_v21  ;;  %v2088_v21 = vld [vmem:[%s2657_s9 + $0xc4] sm:$0xf] }
  0x95   : > { %v1744_v29 = vor.u32 %v2088_v21, %v1741_v22 }
  0xa1   : > { %1000 = vmatmul.bf16.gmra.mxu1 %v1664_v31  ;;  %1089 = vmatmul.bf16.gmra.mxu2 %v1668_v32  ;;  %v1752_v32 = vor.u32 %v2089_v25, %v1749_v26  ;;  %v1795_v25 = vld [vmem:[%s2657_s9 + $0x128] sm:$0xf]  ;;  %v2103_v26 = vld [vmem:[%s2657_s9 + $0x134] sm:$0xf0] }
  0xa4   : > { %1178 = vmatmul.bf16.gmra.mxu3 %v1672_v33  ;;  %v2162_v33 = vld [vmem:[#allocation7 + $0x10] sm:$0xff] }
  0xa5   : > { %1371 = vmatpush.bf16.msrb.mxu0 %v2162_v33 }
  0xa9   : > { %1372 = vmatpush.bf16.msrb.mxu0 %v2161_v38 }
  0xb1   : > { %1005 = vmatmul.bf16.gmra.mxu1 %v1680_v40  ;;  %1094 = vmatmul.bf16.gmra.mxu2 %v1684_v41  ;;  %v1763_v40 = vld [vmem:[%s2657_s9 + $0xe8] sm:$0xf]  ;;  %v2095_v41 = vld [vmem:[%s2657_s9 + $0xf4] sm:$0xf0] }
  0xb2   : > { %v1764_v47 = vor.u32 %v2095_v41, %v1763_v40  ;;  %v1792_v40 = vor.u32 %v2100_v23, %v1789_v24  ;;  %v1796_v41 = vor.u32 %v2103_v26, %v1795_v25 }
  0xb4   : > { %1183 = vmatmul.bf16.gmra.mxu3 %v1688_v42  ;;  %v2093_v42 = vld [vmem:[%s2657_s9 + $0xec] sm:$0xf] }
  0xc1   : > { %1010 = vmatmul.bf16.gmra.mxu1 %v1696_v49  ;;  %1099 = vmatmul.bf16.gmra.mxu2 %v1700_v50  ;;  %v1768_v49 = vor.u32 %v2093_v42, %v1765_v43 }
  0xc4   : > { %1188 = vmatmul.bf16.gmra.mxu3 %v1704_v51  ;;  %v2160_v51 = vld [vmem:[#allocation7] sm:$0xff] }
  0xc5   : > { %1373 = vmatpush.bf16.msrb.mxu0 %v2160_v51 }
  0xce   : > { %v2729_v61 = vpop.f32.mrf.mxu1 }
  0xd0   : > { %v907_v50 = vpop.f32.mrf.mxu0 }
  0xd1   : > { %1015 = vmatmul.bf16.gmra.mxu1 %v1712_v59  ;;  %1104 = vmatmul.bf16.gmra.mxu2 %v1716_v60  ;;  %v2099_v59 = vld [vmem:[%s2657_s9 + $0x114] sm:$0xf0]  ;;  %v2097_v60 = vld [vmem:[%s2657_s9 + $0x10c] sm:$0xf]  ;;  %v908_v9 = vadd.f32 %v2804_v8, %v907_v50 }
  0xd2   : > { %v1780_v5 = vor.u32 %v2099_v59, %v1779_v58 }
  0xd4   : > { %1193 = vmatmul.bf16.gmra.mxu3 %v1720_v62  ;;  %v2731_v0 = vpop.f32.mrf.mxu2  ;;  %v1781_v62 = vld [vmem:[%s2657_s9 + $0x118] sm:$0xf0] }
  0xd5   : > { %v1784_v7 = vor.u32 %v2097_v60, %v1781_v62 }
  0xd6   : > { %v2735_v2 = vpop.f32.mrf.mxu1 }
  0xd7   : > { %v2733_v1 = vpop.f32.mrf.mxu3 }
  0xd8   : > { %v909_v56 = vpop.f32.mrf.mxu0 }
  0xd9   : > { %v910_v21 = vadd.f32 %v2804_v8, %v909_v56 }
  0xdc   : > { %v2743_v10 = vpop.f32.mrf.mxu2 }
  0xde   : > { %v2747_v14 = vpop.f32.mrf.mxu1 }
  0xdf   : > { %v2745_v11 = vpop.f32.mrf.mxu3 }
  0xe1   : > { %1020 = vmatmul.bf16.gmra.mxu1 %v1728_v12  ;;  %1109 = vmatmul.bf16.gmra.mxu2 %v1732_v13  ;;  %v912_v13 = vpop.f32.mrf.mxu0 }
  0xe2   : > { %v913_v50 = vadd.f32 %v2804_v8, %v912_v13  ;;  %v2105_v13 = vld [vmem:[%s2657_s9 + $0x14c] sm:$0xf] }
  0xe4   : > { %1198 = vmatmul.bf16.gmra.mxu3 %v1736_v15  ;;  %v2749_v17 = vpop.f32.mrf.mxu2 }
  0xe6   : > { %v2753_v19 = vpop.f32.mrf.mxu1 }
  0xe7   : > { %v2751_v18 = vpop.f32.mrf.mxu3 }
  0xe9   : > { %v914_v43 = vpop.f32.mrf.mxu0 }
  0xea   : > { %v915_v62 = vadd.f32 %v2804_v8, %v914_v43 }
  0xec   : > { %v2761_v27 = vpop.f32.mrf.mxu2 }
  0xee   : > { %v2765_v31 = vpop.f32.mrf.mxu1 }
  0xef   : > { %v2763_v28 = vpop.f32.mrf.mxu3 }
  0xf1   : > { %1025 = vmatmul.bf16.gmra.mxu1 %v1744_v29  ;;  %1114 = vmatmul.bf16.gmra.mxu2 %v1748_v30  ;;  %v2101_v30 = vld [vmem:[%s2657_s9 + $0x12c] sm:$0xf]  ;;  %v917_v60 = vpop.f32.mrf.mxu0 }
  0xf4   : > { %1203 = vmatmul.bf16.gmra.mxu3 %v1752_v32  ;;  %v2767_v34 = vpop.f32.mrf.mxu2  ;;  %v1797_v32 = vld [vmem:[%s2657_s9 + $0x138] sm:$0xf0] }
  0xf6   : > { %v2771_v36 = vpop.f32.mrf.mxu1 }
  0xf7   : > { %v2769_v35 = vpop.f32.mrf.mxu3 }
  0xfc   : > { %v2779_v44 = vpop.f32.mrf.mxu2 }
  0xfe   : > { %v2783_v48 = vpop.f32.mrf.mxu1 }
  0xff   : > { %v2781_v45 = vpop.f32.mrf.mxu3 }
 0x101   : > { %1030 = vmatmul.bf16.gmra.mxu1 %v1760_v46  ;;  %1119 = vmatmul.bf16.gmra.mxu2 %v1764_v47  ;;  %v1800_v46 = vor.u32 %v2101_v30, %v1797_v32  ;;  %v918_v32 = vadd.f32 %v2804_v8, %v917_v60 }
 0x104   : > { %1208 = vmatmul.bf16.gmra.mxu3 %v1768_v49  ;;  %v2785_v52 = vpop.f32.mrf.mxu2 }
 0x106   : > { %v2789_v54 = vpop.f32.mrf.mxu1 }
 0x107   : > { %v2787_v53 = vpop.f32.mrf.mxu3 }
 0x10c   : > { %v2797_v63 = vpop.f32.mrf.mxu2 }
 0x10e   : > { %v996_v6 = vpop.f32.mrf.mxu1 }
 0x10f   : > { %v2799_v3 = vpop.f32.mrf.mxu3  ;;  %v997_v15 = vadd.f32 %v996_v6, %v908_v9  ;;  %v1805_v6 = vld [vmem:[%s2657_s9 + $0x150] sm:$0xf0]  ;;  %v2107_v9 = vld [vmem:[%s2657_s9 + $0x154] sm:$0xf0] }
 0x111   : > { %1035 = vmatmul.bf16.gmra.mxu1 %v1776_v4  ;;  %1124 = vmatmul.bf16.gmra.mxu2 %v1780_v5  ;;  %v2104_v5 = vld [vmem:[%s2657_s9 + $0x144] sm:$0xf] }
 0x112   : > { %v1808_v23 = vor.u32 %v2104_v5, %v1805_v6 }
 0x114   : > { %1213 = vmatmul.bf16.gmra.mxu3 %v1784_v7  ;;  %v1085_v12 = vpop.f32.mrf.mxu2  ;;  %v1811_v7 = vld [vmem:[%s2657_s9 + $0x148] sm:$0xf] }
 0x115   : > { %v1086_v22 = vadd.f32 %v1085_v12, %v997_v15  ;;  %v1813_v15 = vld [vmem:[%s2657_s9 + $0x158] sm:$0xf0]  ;;  %v1812_v24 = vor.u32 %v2107_v9, %v1811_v7 }
 0x116   : > { %v998_v20 = vpop.f32.mrf.mxu1  ;;  %v1816_v26 = vor.u32 %v2105_v13, %v1813_v15 }
 0x117   : > { %v1174_v16 = vpop.f32.mrf.mxu3  ;;  %v999_v29 = vadd.f32 %v998_v20, %v910_v21 }
 0x118   : > { %v1175_v37 = vadd.f32 %v1174_v16, %v1086_v22 }
 0x11a   : > { %v1254_v49 = vmax.f32 %v1175_v37, 0.0  ;;  %v919_v37 = vpop.f32.mrf.mxu0 }
 0x11b   : > { %v920_v43 = vadd.f32 %v2804_v8, %v919_v37  ;;  %v2115_v37 = vld [vmem:[%s2657_s9 + $0x194] sm:$0xf0] }
 0x11c   : > { %v1087_v33 = vpop.f32.mrf.mxu2 }
 0x11d   : > { %v1088_v38 = vadd.f32 %v1087_v33, %v999_v29 }
 0x11e   : > { %v1001_v42 = vpop.f32.mrf.mxu1 }
 0x11f   : > { %v1176_v39 = vpop.f32.mrf.mxu3  ;;  %v1002_v57 = vadd.f32 %v1001_v42, %v913_v50  ;;  %v1827_v50 = vld [vmem:[%s2657_s9 + $0x168] sm:$0xf] }
 0x120   : > { %v1177_v47 = vadd.f32 %v1176_v39, %v1088_v38 }
 0x121   : > { %1040 = vmatmul.bf16.gmra.mxu1 %v1792_v40  ;;  %1129 = vmatmul.bf16.gmra.mxu2 %v1796_v41 }
 0x122   : > { %v1255_v51 = vmax.f32 %v1177_v47, 0.0  ;;  %v2108_v47 = vld [vmem:[%s2657_s9 + $0x164] sm:$0xf] }
 0x124   : > { %1218 = vmatmul.bf16.gmra.mxu3 %v1800_v46  ;;  %v1286_v55 = vpack.c.bf16 %v1255_v51, %v1254_v49  ;;  %v1090_v56 = vpop.f32.mrf.mxu2  ;;  %v1821_v49 = vld [vmem:[%s2657_s9 + $0x170] sm:$0xf0]  ;;  %v2111_v51 = vld [vmem:[%s2657_s9 + $0x174] sm:$0xf0] }
 0x125   : > { %v1091_v4 = vadd.f32 %v1090_v56, %v1002_v57  ;;  %v2109_v56 = vld [vmem:[%s2657_s9 + $0x16c] sm:$0xf]  ;;  %v1829_v57 = vld [vmem:[%s2657_s9 + $0x178] sm:$0xf0]  ;;  %v1824_v5 = vor.u32 %v2108_v47, %v1821_v49  ;;  %v1828_v6 = vor.u32 %v2111_v51, %v1827_v50 }
 0x126   : > { %1374 = vmatmul.bf16.vlgmr.msrb.gmra.mxu0 %v1286_v55  ;;  %v1003_v59 = vpop.f32.mrf.mxu1  ;;  %v1832_v9 = vor.u32 %v2109_v56, %v1829_v57 }
 0x127   : > { %v1179_v58 = vpop.f32.mrf.mxu3  ;;  %v1004_v12 = vadd.f32 %v1003_v59, %v915_v62 }
 0x128   : > { %v1180_v20 = vadd.f32 %v1179_v58, %v1091_v4  ;;  %v922_v58 = vpop.f32.mrf.mxu0 }
 0x129   : > { %v923_v15 = vadd.f32 %v2804_v8, %v922_v58 }
 0x12a   : > { %v1256_v30 = vmax.f32 %v1180_v20, 0.0 }
 0x12c   : > { %v1092_v16 = vpop.f32.mrf.mxu2 }
 0x12d   : > { %v1093_v21 = vadd.f32 %v1092_v16, %v1004_v12 }
 0x12e   : > { %v1006_v25 = vpop.f32.mrf.mxu1 }
 0x12f   : > { %v1181_v22 = vpop.f32.mrf.mxu3  ;;  %v1007_v40 = vadd.f32 %v1006_v25, %v918_v32  ;;  %v1837_v32 = vld [vmem:[%s2657_s9 + $0x190] sm:$0xf0] }
 0x130   : > { %v1182_v29 = vadd.f32 %v1181_v22, %v1093_v21 }
 0x131   : > { %1045 = vmatmul.bf16.gmra.mxu1 %v1808_v23  ;;  %1134 = vmatmul.bf16.gmra.mxu2 %v1812_v24  ;;  %v924_v24 = vpop.f32.mrf.mxu0 }
 0x132   : > { %v1257_v33 = vmax.f32 %v1182_v29, 0.0 }
 0x134   : > { %1223 = vmatmul.bf16.gmra.mxu3 %v1816_v26  ;;  %v1287_v38 = vpack.c.bf16 %v1257_v33, %v1256_v30  ;;  %v1095_v39 = vpop.f32.mrf.mxu2  ;;  %v925_v26 = vadd.f32 %v2804_v8, %v924_v24  ;;  %v2112_v30 = vld [vmem:[%s2657_s9 + $0x184] sm:$0xf]  ;;  %v1843_v33 = vld [vmem:[%s2657_s9 + $0x188] sm:$0xf] }
 0x135   : > { %v1096_v46 = vadd.f32 %v1095_v39, %v1007_v40  ;;  %v2113_v39 = vld [vmem:[%s2657_s9 + $0x18c] sm:$0xf]  ;;  %v1845_v40 = vld [vmem:[%s2657_s9 + $0x198] sm:$0xf0]  ;;  %v1840_v47 = vor.u32 %v2112_v30, %v1837_v32  ;;  %v1844_v49 = vor.u32 %v2115_v37, %v1843_v33 }
 0x136   : > { %1379 = vmatmul.bf16.gmra.mxu0 %v1287_v38  ;;  %v1008_v42 = vpop.f32.mrf.mxu1  ;;  %v1848_v51 = vor.u32 %v2113_v39, %v1845_v40  ;;  %v933_v39 = vadd.f32 %v2804_v8, %v2747_v14 }
 0x137   : > { %v1184_v41 = vpop.f32.mrf.mxu3  ;;  %v1009_v55 = vadd.f32 %v1008_v42, %v920_v43 }
 0x138   : > { %v1185_v60 = vadd.f32 %v1184_v41, %v1096_v46 }
 0x13a   : > { %v1258_v13 = vmax.f32 %v1185_v60, 0.0  ;;  %v928_v60 = vadd.f32 %v2804_v8, %v2729_v61 }
 0x13c   : > { %v1097_v59 = vpop.f32.mrf.mxu2 }
 0x13d   : > { %v1098_v62 = vadd.f32 %v1097_v59, %v1009_v55 }
 0x13e   : > { %v1011_v7 = vpop.f32.mrf.mxu1 }
 0x13f   : > { %v1186_v4 = vpop.f32.mrf.mxu3  ;;  %v1012_v22 = vadd.f32 %v1011_v7, %v923_v15  ;;  %v2119_v15 = vld [vmem:[%s2657_s9 + $0x1b4] sm:$0xf0] }
 0x140   : > { %v1187_v12 = vadd.f32 %v1186_v4, %v1098_v62 }
 0x141   : > { %1050 = vmatmul.bf16.gmra.mxu1 %v1824_v5  ;;  %1139 = vmatmul.bf16.gmra.mxu2 %v1828_v6  ;;  %v930_v6 = vadd.f32 %v2804_v8, %v2735_v2 }
 0x142   : > { %v1259_v16 = vmax.f32 %v1187_v12, 0.0  ;;  %v1853_v12 = vld [vmem:[%s2657_s9 + $0x1b0] sm:$0xf0] }
 0x144   : > { %1228 = vmatmul.bf16.gmra.mxu3 %v1832_v9  ;;  %v1288_v20 = vpack.c.bf16 %v1259_v16, %v1258_v13  ;;  %v1100_v21 = vpop.f32.mrf.mxu2  ;;  %v2116_v9 = vld [vmem:[%s2657_s9 + $0x1a4] sm:$0xf]  ;;  %v1859_v13 = vld [vmem:[%s2657_s9 + $0x1a8] sm:$0xf] }
 0x145   : > { %v1101_v29 = vadd.f32 %v1100_v21, %v1012_v22  ;;  %v1861_v21 = vld [vmem:[%s2657_s9 + $0x1b8] sm:$0xf0]  ;;  %v1856_v61 = vor.u32 %v2116_v9, %v1853_v12 }
 0x146   : > { %1384 = vmatmul.bf16.gmra.mxu0 %v1288_v20  ;;  %v1013_v25 = vpop.f32.mrf.mxu1  ;;  %v2117_v20 = vld [vmem:[%s2657_s9 + $0x1ac] sm:$0xf] }
 0x147   : > { %v1189_v23 = vpop.f32.mrf.mxu3  ;;  %v1014_v38 = vadd.f32 %v1013_v25, %v925_v26  ;;  %v1860_v26 = vor.u32 %v2119_v15, %v1859_v13  ;;  %v1864_v30 = vor.u32 %v2117_v20, %v1861_v21  ;;  %v938_v15 = vadd.f32 %v2804_v8, %v2765_v31 }
 0x148   : > { %v1190_v42 = vadd.f32 %v1189_v23, %v1101_v29 }
 0x14a   : > { %v1260_v56 = vmax.f32 %v1190_v42, 0.0 }
 0x14c   : > { %v1102_v41 = vpop.f32.mrf.mxu2 }
 0x14d   : > { %v1103_v43 = vadd.f32 %v1102_v41, %v1014_v38 }
 0x14e   : > { %v1016_v50 = vpop.f32.mrf.mxu1 }
 0x14f   : > { %v1191_v46 = vpop.f32.mrf.mxu3  ;;  %v1017_v5 = vadd.f32 %v1016_v50, %v928_v60  ;;  %v1875_v50 = vld [vmem:[%s2657_s9 + $0x1c8] sm:$0xf] }
 0x150   : > { %v1192_v55 = vadd.f32 %v1191_v46, %v1103_v43  ;;  %v935_v43 = vadd.f32 %v2804_v8, %v2753_v19 }
 0x151   : > { %1055 = vmatmul.bf16.gmra.mxu1 %v1840_v47  ;;  %1144 = vmatmul.bf16.gmra.mxu2 %v1844_v49  ;;  %v2120_v47 = vld [vmem:[%s2657_s9 + $0x1c4] sm:$0xf]  ;;  %v1869_v49 = vld [vmem:[%s2657_s9 + $0x1d0] sm:$0xf0] }
 0x152   : > { %v1261_v57 = vmax.f32 %v1192_v55, 0.0  ;;  %v1872_v14 = vor.u32 %v2120_v47, %v1869_v49  ;;  %v943_v49 = vadd.f32 %v2804_v8, %v2783_v48  ;;  %v948_v48 = vadd.f32 %v2804_v8, %v2731_v0 }
 0x154   : > { %1233 = vmatmul.bf16.gmra.mxu3 %v1848_v51  ;;  %v1289_v58 = vpack.c.bf16 %v1261_v57, %v1260_v56  ;;  %v1105_v59 = vpop.f32.mrf.mxu2  ;;  %v2123_v51 = vld [vmem:[%s2657_s9 + $0x1d4] sm:$0xf0]  ;;  %v2121_v56 = vld [vmem:[%s2657_s9 + $0x1cc] sm:$0xf]  ;;  %v1877_v57 = vld [vmem:[%s2657_s9 + $0x1d8] sm:$0xf0] }
 0x155   : > { %v1106_v7 = vadd.f32 %v1105_v59, %v1017_v5 }
 0x156   : > { %1389 = vmatmul.bf16.gmra.mxu0 %v1289_v58  ;;  %v1018_v4 = vpop.f32.mrf.mxu1 }
 0x157   : > { %v1194_v62 = vpop.f32.mrf.mxu3  ;;  %v1019_v16 = vadd.f32 %v1018_v4, %v930_v6  ;;  %v1876_v4 = vor.u32 %v2123_v51, %v1875_v50  ;;  %v1880_v6 = vor.u32 %v2121_v56, %v1877_v57  ;;  %v945_v56 = vadd.f32 %v2804_v8, %v2789_v54 }
 0x158   : > { %v1195_v23 = vadd.f32 %v1194_v62, %v1106_v7  ;;  %v950_v54 = vadd.f32 %v2804_v8, %v2743_v10 }
 0x15a   : > { %v1262_v2 = vmax.f32 %v1195_v23, 0.0 }
 0x15c   : > { %v1107_v22 = vpop.f32.mrf.mxu2 }
 0x15d   : > { %v1108_v24 = vadd.f32 %v1107_v22, %v1019_v16  ;;  %v940_v22 = vadd.f32 %v2804_v8, %v2771_v36 }
 0x15e   : > { %v1021_v29 = vpop.f32.mrf.mxu1 }
 0x15f   : > { %v1196_v25 = vpop.f32.mrf.mxu3  ;;  %v1022_v42 = vadd.f32 %v1021_v29, %v933_v39 }
 0x160   : > { %v1197_v32 = vadd.f32 %v1196_v25, %v1108_v24  ;;  %v2124_v24 = vld [vmem:[%s2657_s9 + $0x1e4] sm:$0xf]  ;;  %v1885_v25 = vld [vmem:[%s2657_s9 + $0x1f0] sm:$0xf0] }
 0x161   : > { %1060 = vmatmul.bf16.gmra.mxu1 %v1856_v61  ;;  %1149 = vmatmul.bf16.gmra.mxu2 %v1860_v26  ;;  %v1891_v61 = vld [vmem:[%s2657_s9 + $0x1e8] sm:$0xf]  ;;  %v2127_v26 = vld [vmem:[%s2657_s9 + $0x1f4] sm:$0xf0]  ;;  %v1888_v31 = vor.u32 %v2124_v24, %v1885_v25 }
 0x162   : > { %v1263_v33 = vmax.f32 %v1197_v32, 0.0  ;;  %v1893_v32 = vld [vmem:[%s2657_s9 + $0x1f8] sm:$0xf0]  ;;  %v1892_v39 = vor.u32 %v2127_v26, %v1891_v61 }
 0x164   : > { %1238 = vmatmul.bf16.gmra.mxu3 %v1864_v30  ;;  %v1290_v37 = vpack.c.bf16 %v1263_v33, %v1262_v2  ;;  %v1110_v38 = vpop.f32.mrf.mxu2  ;;  %v2125_v30 = vld [vmem:[%s2657_s9 + $0x1ec] sm:$0xf] }
 0x165   : > { %v1111_v46 = vadd.f32 %v1110_v38, %v1022_v42 }
 0x166   : > { %1394 = vmatmul.bf16.gmra.mxu0 %v1290_v37  ;;  %v1023_v41 = vpop.f32.mrf.mxu1 }
 0x167   : > { %v1199_v40 = vpop.f32.mrf.mxu3  ;;  %v1024_v55 = vadd.f32 %v1023_v41, %v935_v43  ;;  %v1896_v41 = vor.u32 %v2125_v30, %v1893_v32 }
 0x168   : > { %v1200_v59 = vadd.f32 %v1199_v40, %v1111_v46 }
 0x16a   : > { %v1264_v19 = vmax.f32 %v1200_v59, 0.0 }
 0x16c   : > { %v1112_v58 = vpop.f32.mrf.mxu2 }
 0x16d   : > { %v1113_v60 = vadd.f32 %v1112_v58, %v1024_v55 }
 0x16e   : > { %v1026_v5 = vpop.f32.mrf.mxu1 }
 0x16f   : > { %v1201_v62 = vpop.f32.mrf.mxu3  ;;  %v1027_v21 = vadd.f32 %v1026_v5, %v938_v15 }
 0x170   : > { %v1202_v7 = vadd.f32 %v1201_v62, %v1113_v60 }
 0x171   : > { %1065 = vmatmul.bf16.gmra.mxu1 %v1872_v14  ;;  %1154 = vmatmul.bf16.gmra.mxu2 %v1876_v4 }
 0x172   : > { %v1265_v9 = vmax.f32 %v1202_v7, 0.0 }
 0x174   : > { %1243 = vmatmul.bf16.gmra.mxu3 %v1880_v6  ;;  %v1291_v12 = vpack.c.bf16 %v1265_v9, %v1264_v19  ;;  %v1115_v13 = vpop.f32.mrf.mxu2 }
 0x175   : > { %v1116_v23 = vadd.f32 %v1115_v13, %v1027_v21 }
 0x176   : > { %1399 = vmatmul.bf16.gmra.mxu0 %v1291_v12  ;;  %v1028_v20 = vpop.f32.mrf.mxu1 }
 0x177   : > { %v1204_v16 = vpop.f32.mrf.mxu3  ;;  %v1029_v29 = vadd.f32 %v1028_v20, %v940_v22 }
 0x178   : > { %v1205_v33 = vadd.f32 %v1204_v16, %v1116_v23 }
 0x17a   : > { %v1266_v43 = vmax.f32 %v1205_v33, 0.0 }
 0x17c   : > { %v1117_v2 = vpop.f32.mrf.mxu2 }
 0x17d   : > { %v1118_v37 = vadd.f32 %v1117_v2, %v1029_v29  ;;  %v953_v2 = vadd.f32 %v2804_v8, %v2749_v17 }
 0x17e   : > { %v1031_v40 = vpop.f32.mrf.mxu1 }
 0x17f   : > { %v1206_v38 = vpop.f32.mrf.mxu3  ;;  %v1032_v55 = vadd.f32 %v1031_v40, %v943_v49 }
 0x180   : > { %v1207_v42 = vadd.f32 %v1206_v38, %v1118_v37  ;;  %v955_v38 = vadd.f32 %v2804_v8, %v2761_v27 }
 0x181   : > { %1070 = vmatmul.bf16.gmra.mxu1 %v1888_v31  ;;  %1159 = vmatmul.bf16.gmra.mxu2 %v1892_v39 }
 0x182   : > { %v1267_v46 = vmax.f32 %v1207_v42, 0.0 }
 0x184   : > { %1248 = vmatmul.bf16.gmra.mxu3 %v1896_v41  ;;  %v1292_v36 = vpack.c.bf16 %v1267_v46, %v1266_v43  ;;  %v1120_v47 = vpop.f32.mrf.mxu2 }
 0x185   : > { %v1121_v57 = vadd.f32 %v1120_v47, %v1032_v55 }
 0x186   : > { %1404 = vmatmul.bf16.gmra.mxu0 %v1292_v36  ;;  %v1033_v51 = vpop.f32.mrf.mxu1 }
 0x187   : > { %v1209_v50 = vpop.f32.mrf.mxu3  ;;  %v1034_v58 = vadd.f32 %v1033_v51, %v945_v56  ;;  %v958_v56 = vadd.f32 %v2804_v8, %v2767_v34 }
 0x188   : > { %v1210_v60 = vadd.f32 %v1209_v50, %v1121_v57 }
 0x18a   : > { %v1268_v6 = vmax.f32 %v1210_v60, 0.0  ;;  %v960_v60 = vadd.f32 %v2804_v8, %v2779_v44  ;;  %v963_v44 = vadd.f32 %v2804_v8, %v2785_v52 }
 0x18c   : > { %v1122_v59 = vpop.f32.mrf.mxu2 }
 0x18d   : > { %v1123_v62 = vadd.f32 %v1122_v59, %v1034_v58 }
 0x18e   : > { %v1036_v4 = vpop.f32.mrf.mxu1 }
 0x18f   : > { %v1211_v14 = vpop.f32.mrf.mxu3  ;;  %v1037_v15 = vadd.f32 %v1036_v4, %v948_v48 }
 0x190   : > { %v1212_v5 = vadd.f32 %v1211_v14, %v1123_v62 }
 0x192   : > { %v1269_v7 = vmax.f32 %v1212_v5, 0.0 }
 0x194   : > { %v1293_v19 = vpack.c.bf16 %v1269_v7, %v1268_v6  ;;  %v1125_v9 = vpop.f32.mrf.mxu2 }
 0x195   : > { %v1126_v16 = vadd.f32 %v1125_v9, %v1037_v15 }
 0x196   : > { %1409 = vmatmul.bf16.gmra.mxu0 %v1293_v19  ;;  %v1038_v13 = vpop.f32.mrf.mxu1 }
 0x197   : > { %v1214_v12 = vpop.f32.mrf.mxu3  ;;  %v1039_v20 = vadd.f32 %v1038_v13, %v950_v54 }
 0x198   : > { %v1215_v22 = vadd.f32 %v1214_v12, %v1126_v16 }
 0x19a   : > { %v1270_v26 = vmax.f32 %v1215_v22, 0.0 }
 0x19c   : > { %v1127_v21 = vpop.f32.mrf.mxu2 }
 0x19d   : > { %v1128_v23 = vadd.f32 %v1127_v21, %v1039_v20 }
 0x19e   : > { %v1041_v25 = vpop.f32.mrf.mxu1 }
 0x19f   : > { %v1216_v24 = vpop.f32.mrf.mxu3  ;;  %v1042_v37 = vadd.f32 %v1041_v25, %v953_v2 }
 0x1a0   : > { %v1217_v61 = vadd.f32 %v1216_v24, %v1128_v23  ;;  %v965_v23 = vadd.f32 %v2804_v8, %v2797_v63  ;;  %v968_v63 = vadd.f32 %v2804_v8, %v2733_v1 }
 0x1a2   : > { %v1271_v29 = vmax.f32 %v1217_v61, 0.0 }
 0x1a3   : > { %v1375_v30 = vpop.f32.mrf.mxu0 }
 0x1a4   : > { %v1294_v0 = vpack.c.bf16 %v1271_v29, %v1270_v26  ;;  %v1130_v32 = vpop.f32.mrf.mxu2 }
 0x1a5   : > { %v1131_v31 = vadd.f32 %v1130_v32, %v1042_v37 }
 0x1a6   : > { %1414 = vmatmul.bf16.gmra.mxu0 %v1294_v0  ;;  %v1043_v10 = vpop.f32.mrf.mxu1 }
 0x1a7   : > { %v1219_v33 = vpop.f32.mrf.mxu3  ;;  %v1044_v40 = vadd.f32 %v1043_v10, %v955_v38 }
 0x1a8   : > { %v1220_v43 = vadd.f32 %v1219_v33, %v1131_v31 }
 0x1aa   : > { %v1272_v49 = vmax.f32 %v1220_v43, 0.0 }
 0x1ab   : > { %v1377_v39 = vpop.f32.mrf.mxu0 }
 0x1ac   : > { %v2172_v41 = vpack.c.bf16 %v1377_v39, %v1375_v30  ;;  %v1132_v42 = vpop.f32.mrf.mxu2 }
 0x1ad   : > { %v1133_v46 = vadd.f32 %v1132_v42, %v1044_v40  ;;  %v970_v42 = vadd.f32 %v2804_v8, %v2745_v11  ;;  %v973_v11 = vadd.f32 %v2804_v8, %v2751_v18 }
 0x1ae   : > { %2173 = vst [vmem:[%s2881_s5] sm:$0xff] %v2172_v41   ;;  %v1046_v36 = vpop.f32.mrf.mxu1 }
 0x1af   : > { %v1221_v17 = vpop.f32.mrf.mxu3  ;;  %v1047_v59 = vadd.f32 %v1046_v36, %v958_v56 }
 0x1b0   : > { %v1222_v47 = vadd.f32 %v1221_v17, %v1133_v46 }
 0x1b2   : > { %v1273_v50 = vmax.f32 %v1222_v47, 0.0 }
 0x1b3   : > { %v1380_v51 = vpop.f32.mrf.mxu0 }
 0x1b4   : > { %v1295_v55 = vpack.c.bf16 %v1273_v50, %v1272_v49  ;;  %v1135_v27 = vpop.f32.mrf.mxu2 }
 0x1b5   : > { %v1136_v62 = vadd.f32 %v1135_v27, %v1047_v59 }
 0x1b6   : > { %1419 = vmatmul.bf16.gmra.mxu0 %v1295_v55  ;;  %v1048_v58 = vpop.f32.mrf.mxu1 }
 0x1b7   : > { %v1224_v57 = vpop.f32.mrf.mxu3  ;;  %v1049_v4 = vadd.f32 %v1048_v58, %v960_v60 }
 0x1b8   : > { %v1225_v7 = vadd.f32 %v1224_v57, %v1136_v62 }
 0x1ba   : > { %v1274_v13 = vmax.f32 %v1225_v7, 0.0 }
 0x1bb   : > { %v1382_v14 = vpop.f32.mrf.mxu0 }
 0x1bc   : > { %v2177_v5 = vpack.c.bf16 %v1382_v14, %v1380_v51  ;;  %v1137_v6 = vpop.f32.mrf.mxu2 }
 0x1bd   : > { %v1138_v19 = vadd.f32 %v1137_v6, %v1049_v4  ;;  %v975_v4 = vadd.f32 %v2804_v8, %v2763_v28  ;;  %v978_v28 = vadd.f32 %v2804_v8, %v2769_v35 }
 0x1be   : > { %2249 = vst [vmem:[%s2881_s5 + $0x8] sm:$0xff] %v2177_v5   ;;  %v1051_v48 = vpop.f32.mrf.mxu1 }
 0x1bf   : > { %v1226_v9 = vpop.f32.mrf.mxu3  ;;  %v1052_v22 = vadd.f32 %v1051_v48, %v963_v44 }
 0x1c0   : > { %v1227_v12 = vadd.f32 %v1226_v9, %v1138_v19 }
 0x1c2   : > { %v1275_v34 = vmax.f32 %v1227_v12, 0.0 }
 0x1c3   : > { %v1385_v15 = vpop.f32.mrf.mxu0 }
 0x1c4   : > { %v1296_v54 = vpack.c.bf16 %v1275_v34, %v1274_v13  ;;  %v1140_v16 = vpop.f32.mrf.mxu2 }
 0x1c5   : > { %v1141_v24 = vadd.f32 %v1140_v16, %v1052_v22 }
 0x1c6   : > { %1424 = vmatmul.bf16.gmra.mxu0 %v1296_v54  ;;  %v1053_v21 = vpop.f32.mrf.mxu1 }
 0x1c7   : > { %v1229_v20 = vpop.f32.mrf.mxu3  ;;  %v1054_v61 = vadd.f32 %v1053_v21, %v965_v23 }
 0x1c8   : > { %v1230_v30 = vadd.f32 %v1229_v20, %v1141_v24  ;;  %v980_v24 = vadd.f32 %v2804_v8, %v2781_v45  ;;  %v983_v45 = vadd.f32 %v2804_v8, %v2787_v53 }
 0x1ca   : > { %v1276_v10 = vmax.f32 %v1230_v30, 0.0 }
 0x1cb   : > { %v1387_v25 = vpop.f32.mrf.mxu0 }
 0x1cc   : > { %v2182_v26 = vpack.c.bf16 %v1387_v25, %v1385_v15  ;;  %v1142_v29 = vpop.f32.mrf.mxu2 }
 0x1cd   : > { %v1143_v0 = vadd.f32 %v1142_v29, %v1054_v61 }
 0x1ce   : > { %2250 = vst [vmem:[%s2881_s5 + $0x10] sm:$0xff] %v2182_v26   ;;  %v1056_v2 = vpop.f32.mrf.mxu1 }
 0x1cf   : > { %v1231_v32 = vpop.f32.mrf.mxu3  ;;  %v1057_v41 = vadd.f32 %v1056_v2, %v968_v63 }
 0x1d0   : > { %v1232_v33 = vadd.f32 %v1231_v32, %v1143_v0 }
 0x1d2   : > { %v1277_v52 = vmax.f32 %v1232_v33, 0.0 }
 0x1d3   : > { %v1390_v37 = vpop.f32.mrf.mxu0 }
 0x1d4   : > { %v1297_v38 = vpack.c.bf16 %v1277_v52, %v1276_v10  ;;  %v1145_v31 = vpop.f32.mrf.mxu2 }
 0x1d5   : > { %v1146_v43 = vadd.f32 %v1145_v31, %v1057_v41  ;;  %v985_v41 = vadd.f32 %v2804_v8, %v2799_v3 }
 0x1d6   : > { %1429 = vmatmul.bf16.gmra.mxu0 %v1297_v38  ;;  %v1058_v40 = vpop.f32.mrf.mxu1 }
 0x1d7   : > { %v1234_v39 = vpop.f32.mrf.mxu3  ;;  %v1059_v17 = vadd.f32 %v1058_v40, %v970_v42 }
 0x1d8   : > { %v1235_v49 = vadd.f32 %v1234_v39, %v1146_v43 }
 0x1da   : > { %v1278_v56 = vmax.f32 %v1235_v49, 0.0 }
 0x1db   : > { %v1392_v46 = vpop.f32.mrf.mxu0 }
 0x1dc   : > { %v2187_v36 = vpack.c.bf16 %v1392_v46, %v1390_v37  ;;  %v1147_v47 = vpop.f32.mrf.mxu2 }
 0x1dd   : > { %v1148_v50 = vadd.f32 %v1147_v47, %v1059_v17 }
 0x1de   : > { %2251 = vst [vmem:[%s2881_s5 + $0x18] sm:$0xff] %v2187_v36   ;;  %v1061_v55 = vpop.f32.mrf.mxu1 }
 0x1df   : > { %v1236_v51 = vpop.f32.mrf.mxu3  ;;  %v1062_v14 = vadd.f32 %v1061_v55, %v973_v11 }
 0x1e0   : > { %v1237_v27 = vadd.f32 %v1236_v51, %v1148_v50 }
 0x1e2   : > { %v1279_v1 = vmax.f32 %v1237_v27, 0.0 }
 0x1e3   : > { %v1395_v57 = vpop.f32.mrf.mxu0 }
 0x1e4   : > { %v1298_v58 = vpack.c.bf16 %v1279_v1, %v1278_v56  ;;  %v1150_v59 = vpop.f32.mrf.mxu2 }
 0x1e5   : > { %v1151_v5 = vadd.f32 %v1150_v59, %v1062_v14 }
 0x1e6   : > { %1434 = vmatmul.bf16.gmra.mxu0 %v1298_v58  ;;  %v1063_v62 = vpop.f32.mrf.mxu1 }
 0x1e7   : > { %v1239_v60 = vpop.f32.mrf.mxu3  ;;  %v1064_v7 = vadd.f32 %v1063_v62, %v975_v4 }
 0x1e8   : > { %v1240_v48 = vadd.f32 %v1239_v60, %v1151_v5 }
 0x1ea   : > { %v1280_v54 = vmax.f32 %v1240_v48, 0.0 }
 0x1eb   : > { %v1397_v6 = vpop.f32.mrf.mxu0 }
 0x1ec   : > { %v2192_v19 = vpack.c.bf16 %v1397_v6, %v1395_v57  ;;  %v1152_v9 = vpop.f32.mrf.mxu2 }
 0x1ed   : > { %v1153_v12 = vadd.f32 %v1152_v9, %v1064_v7 }
 0x1ee   : > { %2252 = vst [vmem:[%s2881_s5 + $0x20] sm:$0xff] %v2192_v19   ;;  %v1066_v34 = vpop.f32.mrf.mxu1 }
 0x1ef   : > { %v1241_v13 = vpop.f32.mrf.mxu3  ;;  %v1067_v23 = vadd.f32 %v1066_v34, %v978_v28 }
 0x1f0   : > { %v1242_v15 = vadd.f32 %v1241_v13, %v1153_v12 }
 0x1f2   : > { %v1281_v18 = vmax.f32 %v1242_v15, 0.0 }
 0x1f3   : > { %v1400_v16 = vpop.f32.mrf.mxu0 }
 0x1f4   : > { %v1299_v44 = vpack.c.bf16 %v1281_v18, %v1280_v54  ;;  %v1155_v20 = vpop.f32.mrf.mxu2 }
 0x1f5   : > { %v1156_v25 = vadd.f32 %v1155_v20, %v1067_v23 }
 0x1f6   : > { %1439 = vmatmul.bf16.gmra.mxu0 %v1299_v44  ;;  %v1068_v22 = vpop.f32.mrf.mxu1 }
 0x1f7   : > { %v1244_v21 = vpop.f32.mrf.mxu3  ;;  %v1069_v26 = vadd.f32 %v1068_v22, %v980_v24 }
 0x1f8   : > { %v1245_v0 = vadd.f32 %v1244_v21, %v1156_v25 }
 0x1fa   : > { %v1282_v52 = vmax.f32 %v1245_v0, 0.0 }
 0x1fb   : > { %v1402_v61 = vpop.f32.mrf.mxu0 }
 0x1fc   : > { %v2197_v29 = vpack.c.bf16 %v1402_v61, %v1400_v16  ;;  %v1157_v30 = vpop.f32.mrf.mxu2 }
 0x1fd   : > { %v1158_v32 = vadd.f32 %v1157_v30, %v1069_v26 }
 0x1fe   : > { %2253 = vst [vmem:[%s2881_s5 + $0x28] sm:$0xff] %v2197_v29   ;;  %v1071_v33 = vpop.f32.mrf.mxu1 }
 0x1ff   : > { %v1246_v2 = vpop.f32.mrf.mxu3  ;;  %v1072_v39 = vadd.f32 %v1071_v33, %v983_v45 }
 0x200   : > { %v1247_v10 = vadd.f32 %v1246_v2, %v1158_v32 }
 0x202   : > { %v1283_v35 = vmax.f32 %v1247_v10, 0.0 }
 0x203   : > { %v1405_v37 = vpop.f32.mrf.mxu0 }
 0x204   : > { %v1300_v38 = vpack.c.bf16 %v1283_v35, %v1282_v52  ;;  %v1160_v31 = vpop.f32.mrf.mxu2 }
 0x205   : > { %v1161_v42 = vadd.f32 %v1160_v31, %v1072_v39 }
 0x206   : > { %1444 = vmatmul.bf16.gmra.mxu0 %v1300_v38  ;;  %v1073_v40 = vpop.f32.mrf.mxu1 }
 0x207   : > { %v1249_v63 = vpop.f32.mrf.mxu3  ;;  %v1074_v46 = vadd.f32 %v1073_v40, %v985_v41 }
 0x208   : > { %v1250_v47 = vadd.f32 %v1249_v63, %v1161_v42 }
 0x20a   : > { %v1284_v53 = vmax.f32 %v1250_v47, 0.0 }
 0x20b   : > { %v1407_v43 = vpop.f32.mrf.mxu0 }
 0x20c   : > { %v2202_v17 = vpack.c.bf16 %v1407_v43, %v1405_v37  ;;  %v1162_v36 = vpop.f32.mrf.mxu2 }
 0x20d   : > { %v1163_v49 = vadd.f32 %v1162_v36, %v1074_v46 }
 0x20e   : > { %2254 = vst [vmem:[%s2881_s5 + $0x30] sm:$0xff] %v2202_v17  }
 0x20f   : > { %v1251_v50 = vpop.f32.mrf.mxu3 }
 0x210   : > { %v1252_v51 = vadd.f32 %v1251_v50, %v1163_v49 }
 0x212   : > { %v1285_v55 = vmax.f32 %v1252_v51, 0.0 }
 0x213   : > { %v1410_v27 = vpop.f32.mrf.mxu0 }
 0x214   : > { %v1301_v56 = vpack.c.bf16 %v1285_v55, %v1284_v53 }
 0x216   : > { %1449 = vmatmul.bf16.gmra.mxu0 %v1301_v56 }
 0x21b   : > { %v1412_v3 = vpop.f32.mrf.mxu0 }
 0x21c   : > { %v2207_v8 = vpack.c.bf16 %v1412_v3, %v1410_v27 }
 0x21e   : > { %2255 = vst [vmem:[%s2881_s5 + $0x38] sm:$0xff] %v2207_v8  }
 0x223   : > { %v1415_v1 = vpop.f32.mrf.mxu0 }
 0x22b   : > { %v1417_v57 = vpop.f32.mrf.mxu0 }
 0x22c   : > { %v2212_v58 = vpack.c.bf16 %v1417_v57, %v1415_v1 }
 0x22e   : > { %2256 = vst [vmem:[%s2881_s5 + $0x40] sm:$0xff] %v2212_v58  }
 0x233   : > { %v1420_v59 = vpop.f32.mrf.mxu0 }
 0x23b   : > { %v1422_v11 = vpop.f32.mrf.mxu0 }
 0x23c   : > { %v2217_v60 = vpack.c.bf16 %v1422_v11, %v1420_v59 }
 0x23e   : > { %2257 = vst [vmem:[%s2881_s5 + $0x48] sm:$0xff] %v2217_v60  }
 0x243   : > { %v1425_v62 = vpop.f32.mrf.mxu0 }
 0x24b   : > { %v1427_v14 = vpop.f32.mrf.mxu0 }
 0x24c   : > { %v2222_v4 = vpack.c.bf16 %v1427_v14, %v1425_v62 }
 0x24e   : > { %2258 = vst [vmem:[%s2881_s5 + $0x50] sm:$0xff] %v2222_v4  }
 0x253   : > { %v1430_v5 = vpop.f32.mrf.mxu0 }
 0x25b   : > { %v1432_v6 = vpop.f32.mrf.mxu0 }
 0x25c   : > { %v2227_v7 = vpack.c.bf16 %v1432_v6, %v1430_v5 }
 0x25e   : > { %2259 = vst [vmem:[%s2881_s5 + $0x58] sm:$0xff] %v2227_v7  }
 0x263   : > { %v1435_v19 = vpop.f32.mrf.mxu0 }
 0x26b   : > { %v1437_v9 = vpop.f32.mrf.mxu0 }
 0x26c   : > { %v2232_v48 = vpack.c.bf16 %v1437_v9, %v1435_v19 }
 0x26e   : > { %2260 = vst [vmem:[%s2881_s5 + $0x60] sm:$0xff] %v2232_v48  }
 0x273   : > { %v1440_v12 = vpop.f32.mrf.mxu0 }
 0x27b   : > { %v1442_v13 = vpop.f32.mrf.mxu0 }
 0x27c   : > { %v2237_v34 = vpack.c.bf16 %v1442_v13, %v1440_v12 }
 0x27e   : > { %2261 = vst [vmem:[%s2881_s5 + $0x68] sm:$0xff] %v2237_v34  }
 0x283   : > { %v1445_v15 = vpop.f32.mrf.mxu0 }
 0x28b   : > { %v1447_v54 = vpop.f32.mrf.mxu0 }
 0x28c   : > { %v2242_v18 = vpack.c.bf16 %v1447_v54, %v1445_v15 }
 0x28e   : > { %2262 = vst [vmem:[%s2881_s5 + $0x70] sm:$0xff] %v2242_v18  }
 0x293   : > { %v1450_v16 = vpop.f32.mrf.mxu0 }
 0x29b   : > { %v1452_v44 = vpop.f32.mrf.mxu0 }
 0x29c   : > { %v2247_v20 = vpack.c.bf16 %v1452_v44, %v1450_v16 }
 0x29e   : > { %2263 = vst [vmem:[%s2881_s5 + $0x78] sm:$0xff] %v2247_v20  }
 0x29f   : > { %2479 = shalt.err (!%p2476_p10)
}
 0x2a0   : > { %s2530_s28 = smov 64   ;;  %s2531_s26 = smov 4  }
 0x2a1   : > { %2298 = dma.vmem_to_hbm [thread:$0]  (%p2623_p3), %s1533_s23, 2048, %s1535_s24, %s1520_s25, %s2530_s28, %s2530_s28, %s2531_s26  }
 0x2a2 PF: > { %s1549_s30 = sand.u32 1, %s2510_s15   ;;  %p2967_p12 = scmp.ge.s32.totalorder %s2522_s18, 2 }
 0x2a3   : > { %s1550_s5 = scalar_lea.sflag [#allocation4], %s1549_s30 }
 0x2a4   : > { %p2312_p13 = pnand %p2967_p12, %p2592_p6 }
 0x2a6   : > { %p2313_p0 = pneg %p2312_p13 }
 0x2a8   : > { %2505 = dma.done.wait (%p2313_p0), %s1550_s5, 2048  }
 0x2a9   : > { %2507 = vsyncadd (%p2313_p0), %s1550_s5, 4294965248  ;;  %p18_p5 = scmp.ge.s32.totalorder %s2613_s10, 4   ;;  %s2968_s15 = smov %s2514_s16 }
 0x2aa   : > { %s2969_s16 = smov %s2518_s17  ;;  %s2970_s17 = smov %s2629_s14 }
 0x2ab   : > { %s2971_s18 = smov %s2613_s10  ;;  %20 = sbr.rel (!%p18_p5) target bundleno = 6 (0x6), region = 89 }
 0x2b0   :  { %1556 = vsyncpa [#allocation3], 1 }
 0x2b1   :  { %1558 = vsyncpa [#allocation3 + $0x1], 1 }
 0x2b2   :  { %1559 = vsyncpa [#allocation6], 1 }
 0x2b3   :  { %1560 = vsyncpa [#allocation4], 1 }
 0x2b4   :  { %1562 = vsyncpa [#allocation4 + $0x1], 1 }

</bundles_post_ra>
